<compile_context>
chip_gen: v5e
topology: v5e:2x2
jax: 0.10.0
libtpu: 0.0.40
codegen_flags: <defaults>
</compile_context>

<pallas_src>
import functools
import math

import jax
import jax.numpy as jnp
import numpy as np
from jax.experimental import pallas as pl
from jax.experimental.pallas import tpu as pltpu

EPS = 1e-5          # PyTorch nn.LayerNorm default eps
_MIB = 1024 * 1024


# ----------------------------------------------------------------------------
# VMEM budget: derive from the actual chip, leave headroom (review items 7/8).
# ----------------------------------------------------------------------------
@functools.lru_cache(maxsize=None)
def _vmem_limit_bytes():
    cap = None
    try:
        cap = int(pltpu.get_tpu_info().vmem_capacity_bytes)
    except Exception:
        cap = None
    if cap is None:
        cap = 128 * _MIB
        try:
            if "v7" in jax.devices()[0].device_kind.lower():
                cap = 64 * _MIB           # v7x has 64 MiB VMEM per TensorCore
        except Exception:
            pass
    # >= 12 MiB headroom for compiler-internal scratch / i-o double buffers;
    # never request more than ~110 MiB even on 128-MiB parts.
    return int(min(cap - 12 * _MIB, 110 * _MIB))


def _compiler_params(dimension_semantics):
    return pltpu.CompilerParams(dimension_semantics=dimension_semantics,
                                vmem_limit_bytes=_vmem_limit_bytes())


# ----------------------------------------------------------------------------
# Grid-invariant operands (weights / biases / LN params): single-buffer them.
# Default double buffering would keep two VMEM copies of every weight even
# though the block index never changes across the grid (review item 1).
# ----------------------------------------------------------------------------
def _const_spec(shape, index_map):
    try:
        return pl.BlockSpec(shape, index_map,
                            pipeline_mode=pl.Buffered(buffer_count=1))
    except (AttributeError, TypeError):   # older jax: fall back to default buffering
        return pl.BlockSpec(shape, index_map)


# ----------------------------------------------------------------------------
# In-kernel math helpers (elementwise math stays f32)
# ----------------------------------------------------------------------------
def _layernorm(x, w, b):
    mu = jnp.mean(x, axis=-1, keepdims=True)
    xc = x - mu
    var = jnp.mean(xc * xc, axis=-1, keepdims=True)
    return xc * jax.lax.rsqrt(var + EPS) * w + b


def _erf(x):
    # Abramowitz & Stegun 7.1.26 rational approximation (|err| <= 1.5e-7).
    # Avoids relying on an erf lowering in Mosaic; only uses exp/mul/add/where.
    a1, a2, a3, a4, a5 = (0.254829592, -0.284496736, 1.421413741,
                          -1.453152027, 1.061405429)
    p = 0.3275911
    ax = jnp.abs(x)
    t = 1.0 / (1.0 + p * ax)
    poly = ((((a5 * t + a4) * t + a3) * t + a2) * t + a1) * t
    y = 1.0 - poly * jnp.exp(-ax * ax)
    return jnp.where(x >= 0.0, y, -y)


def _gelu_exact(x):
    # nn.GELU() default = exact (erf) formulation.
    return 0.5 * x * (1.0 + _erf(x * (1.0 / math.sqrt(2.0))))


# q @ k^T without materializing k.T: contract the last dims of both operands.
_TRANS_B_DIMS = (((1,), (1,)), ((), ()))


# ----------------------------------------------------------------------------
# Pallas kernels
# ----------------------------------------------------------------------------
def _block_kernel(n_head,
                  x_ref, ln1w_ref, ln1b_ref, wqkv_ref, bqkv_ref,
                  wpr_ref, bpr_ref, ln2w_ref, ln2b_ref,
                  wfc_ref, bfc_ref, wmp_ref, bmp_ref,
                  o_ref):
    x = x_ref[0]                                   # (T, C) f32
    T, C = x.shape
    hd = C // n_head
    scale = 1.0 / math.sqrt(hd)
    bf16 = jnp.bfloat16
    f32 = jnp.float32

    # ---- attention branch: x + c_proj(MHA(ln_1(x))) ----
    xn = _layernorm(x, ln1w_ref[0], ln1b_ref[0])
    qkv = jnp.dot(xn.astype(bf16), wqkv_ref[...],
                  preferred_element_type=f32) + bqkv_ref[0]      # (T, 3C) f32

    row = jax.lax.broadcasted_iota(jnp.int32, (T, T), 0)
    col = jax.lax.broadcasted_iota(jnp.int32, (T, T), 1)
    causal = col <= row        # module's lower-triangular `bias` buffer, in-kernel

    # Per-head attention.  Each head's (T, hd) output is contracted directly
    # against the matching (hd, C) rows of c_proj and accumulated into a
    # lane-dense (T, C) value: no (T, C) scratch and no sub-128-lane masked
    # stores (review: lane-align / bf16-scratch items).  Trade-off: K=hd on the
    # c_proj matmuls instead of a single K=C matmul.
    # TODO(synk): for long T, switch to flash-style Tq x Tk tiling with online
    # softmax and skipping of fully-masked causal blocks (bounds attention VMEM
    # and recovers ~50% of the masked q@kT / exp work).
    # TODO(synk): for large n_head move heads onto a fori_loop / grid axis to
    # bound live ranges; static unroll is fine for small head counts.
    att_out = jnp.zeros((T, C), f32)
    for h in range(n_head):                        # static (unrolled) head loop
        lo, hi = h * hd, (h + 1) * hd
        # fold 1/sqrt(hd) into q before the matmul (T*hd mults, not T*T)
        q = (qkv[:, lo:hi] * scale).astype(bf16)
        k = qkv[:, C + lo:C + hi].astype(bf16)
        v = qkv[:, 2 * C + lo:2 * C + hi].astype(bf16)
        att = jax.lax.dot_general(q, k, _TRANS_B_DIMS,
                                  preferred_element_type=f32)    # (T, T)
        # -inf is safe here: the diagonal is always unmasked, so every row has
        # a finite max and a nonzero softmax denominator.
        att = jnp.where(causal, att, -jnp.inf)
        att = jnp.exp(att - jnp.max(att, axis=-1, keepdims=True))
        att = att * pl.reciprocal(jnp.sum(att, axis=-1, keepdims=True),
                                  approx=True)     # EUP reciprocal, no VPU divide
        head = jnp.dot(att.astype(bf16), v, preferred_element_type=f32)  # (T, hd)
        att_out = att_out + jnp.dot(head.astype(bf16), wpr_ref[lo:hi, :],
                                    preferred_element_type=f32)          # (T, C)
    x = x + att_out + bpr_ref[0]                   # attn dropout: identity (p=0)

    # ---- MLP branch: x + c_proj(GELU(c_fc(ln_2(x)))) ----
    # TODO(synk): for v7x (64 MiB VMEM) at GPT-2 sizes, tile T and the 4C hidden
    # dim with an inner pltpu.emit_pipeline instead of keeping the (T, 4C) f32
    # intermediate fully VMEM-resident.
    xn = _layernorm(x, ln2w_ref[0], ln2b_ref[0])
    h1 = jnp.dot(xn.astype(bf16), wfc_ref[...],
                 preferred_element_type=f32) + bfc_ref[0]
    h1 = _gelu_exact(h1)
    h2 = jnp.dot(h1.astype(bf16), wmp_ref[...],
                 preferred_element_type=f32) + bmp_ref[0]

    o_ref[0] = x + h2                              # mlp dropout: identity (p=0)


def _final_kernel(x_ref, lnw_ref, lnb_ref, whead_ref, o_ref, xn_sc):
    # Hoist ln_f + bf16 cast out of the vocab-tile loop: the vocab axis is the
    # innermost grid axis, so compute LN once per row tile and stash it.
    @pl.when(pl.program_id(1) == 0)
    def _():
        xn_sc[...] = _layernorm(x_ref[...], lnw_ref[0],
                                lnb_ref[0]).astype(jnp.bfloat16)
    o_ref[...] = jnp.dot(xn_sc[...], whead_ref[...],
                         preferred_element_type=jnp.float32).astype(o_ref.dtype)


# ----------------------------------------------------------------------------
# Wrappers (pallas_call plumbing)
# ----------------------------------------------------------------------------
def transformer_block(x, p, n_head):
    # NOTE: best performance when C is a multiple of 128 and T a multiple of 8
    # (last dim maps to the 128-lane axis); other sizes work but pad vregs.
    # TODO(synk): overlap layer l+1's weight DMA with layer l's compute via a
    # cross-pallas_call prefetch (or a K-tiled "arbitrary" grid axis over C).
    B, T, C = x.shape

    def wmap(b):                                   # weights: constant block index
        return (0, 0)

    in_specs = [
        pl.BlockSpec((1, T, C), lambda b: (b, 0, 0)),                    # x
        _const_spec((1, C), wmap), _const_spec((1, C), wmap),            # ln_1 w,b
        _const_spec((C, 3 * C), wmap), _const_spec((1, 3 * C), wmap),    # attn qkv
        _const_spec((C, C), wmap), _const_spec((1, C), wmap),            # attn c_proj
        _const_spec((1, C), wmap), _const_spec((1, C), wmap),            # ln_2 w,b
        _const_spec((C, 4 * C), wmap), _const_spec((1, 4 * C), wmap),    # mlp c_fc
        _const_spec((4 * C, C), wmap), _const_spec((1, C), wmap),        # mlp c_proj
    ]
    return pl.pallas_call(
        functools.partial(_block_kernel, n_head),
        out_shape=jax.ShapeDtypeStruct((B, T, C), jnp.float32),
        grid=(B,),
        in_specs=in_specs,
        out_specs=pl.BlockSpec((1, T, C), lambda b: (b, 0, 0)),
        compiler_params=_compiler_params(("parallel",)),   # batch rows independent
    )(x, p["ln1_w"], p["ln1_b"], p["w_qkv"], p["b_qkv"],
      p["w_proj"], p["b_proj"], p["ln2_w"], p["ln2_b"],
      p["w_fc"], p["b_fc"], p["w_mproj"], p["b_mproj"])


def _round_up(x, m):
    return ((x + m - 1) // m) * m


def final_head(x, ln_w, ln_b, w_head, logits_dtype=jnp.float32):
    """ln_f + lm_head.

    Rows are the flattened (B*T) stream so the MXU M-dim is large even for
    short sequences; the vocab is tiled (and zero-padded up to the tile) so the
    (C, V) weight and the logits never have to be fully VMEM-resident — works
    for non-128-divisible vocabularies like 50257.  Pass
    logits_dtype=jnp.bfloat16 to halve the (B, T, V) HBM writeback (the
    dominant cost of this kernel); default f32 matches the PyTorch module.
    """
    B, T, C = x.shape
    V = w_head.shape[1]
    R = B * T
    x2 = x.reshape(R, C)

    tr = min(512, _round_up(R, 8))             # row tile (multiple of 8)
    tv = min(2048, _round_up(V, 128))          # vocab tile (multiple of 128)
    v_pad = _round_up(V, tv)
    if v_pad != V:
        # TODO(synk): do this zero-pad once at parameter-setup time, not per call.
        w_head = jnp.pad(w_head, ((0, 0), (0, v_pad - V)))

    out = pl.pallas_call(
        _final_kernel,
        out_shape=jax.ShapeDtypeStruct((R, v_pad), logits_dtype),
        grid=(pl.cdiv(R, tr), v_pad // tv),    # vocab axis innermost
        in_specs=[
            pl.BlockSpec((tr, C), lambda r, v: (r, 0)),            # x rows
            _const_spec((1, C), lambda r, v: (0, 0)),              # ln_f w
            _const_spec((1, C), lambda r, v: (0, 0)),              # ln_f b
            # w_head changes every (innermost) vocab step -> keep default
            # double buffering so its DMA overlaps the matmul.
            pl.BlockSpec((C, tv), lambda r, v: (0, v)),
        ],
        out_specs=pl.BlockSpec((tr, tv), lambda r, v: (r, v)),
        scratch_shapes=[pltpu.VMEM((tr, C), jnp.bfloat16)],        # stashed ln_f(x)
        compiler_params=_compiler_params(("parallel", "arbitrary")),
    )(x2, ln_w, ln_b, w_head)

    if v_pad != V:
        out = out[:, :V]
    return out.reshape(B, T, V)


def simple_gpt_forward(params, input_ids, cfg):
    B, T = input_ids.shape
    assert T <= cfg["block_size"]
    # embedding gathers done in plain JAX glue
    tok = jnp.take(params["wte"], input_ids, axis=0)          # (B, T, C)
    pos = params["wpe"][:T][None, :, :]                       # (1, T, C)
    x = tok + pos                                             # drop: identity (p=0)
    for lp in params["blocks"]:
        x = transformer_block(x, lp, cfg["n_head"])
    logits = final_head(x, params["ln_f_w"], params["ln_f_b"], params["w_head"])
    return (logits,)
    # TODO(synk): cross-entropy loss branch (targets != None) left to host-side
    # JAX glue (or fuse softmax/CE into _final_kernel to avoid the V-wide writeback).


# ----------------------------------------------------------------------------
# Deterministic parameter init (matches the module's shapes / init scheme).
# Matmul weights stored bf16 (MXU operands); LN params / biases / embeddings f32.
# ----------------------------------------------------------------------------
def init_params(key, cfg):
    C, V, BS, L = cfg["n_embd"], cfg["vocab_size"], cfg["block_size"], cfg["n_layer"]
    std = 0.02
    std_proj = 0.02 / math.sqrt(2 * L)   # c_proj.weight override

    keys = iter(jax.random.split(key, 8 + 12 * L))

    def nrm(shape, s, dtype=jnp.float32):
        return (s * jax.random.normal(next(keys), shape)).astype(dtype)

    params = {
        "wte": nrm((V, C), std),
        "wpe": nrm((BS, C), std),
        "ln_f_w": jnp.ones((1, C), jnp.float32),
        "ln_f_b": jnp.zeros((1, C), jnp.float32),
        "w_head": nrm((C, V), std, jnp.bfloat16),   # lm_head (no bias), (in, out)
        "blocks": [],
    }
    for _ in range(L):
        params["blocks"].append({
            "ln1_w": jnp.ones((1, C), jnp.float32),
            "ln1_b": jnp.zeros((1, C), jnp.float32),
            "w_qkv": nrm((C, 3 * C), std, jnp.bfloat16),
            "b_qkv": jnp.zeros((1, 3 * C), jnp.float32),
            "w_proj": nrm((C, C), std_proj, jnp.bfloat16),
            "b_proj": jnp.zeros((1, C), jnp.float32),
            "ln2_w": jnp.ones((1, C), jnp.float32),
            "ln2_b": jnp.zeros((1, C), jnp.float32),
            "w_fc": nrm((C, 4 * C), std, jnp.bfloat16),
            "b_fc": jnp.zeros((1, 4 * C), jnp.float32),
            "w_mproj": nrm((4 * C, C), std_proj, jnp.bfloat16),
            "b_mproj": jnp.zeros((1, C), jnp.float32),
        })
    return params


# ----------------------------------------------------------------------------
# Pure-JAX reference.  mxu_dtype=bf16 reproduces the kernel's cast points
# (f32 accumulation) for a tight check; mxu_dtype=f32 gives the "true" math
# for a looser sanity check documenting the intentional bf16 precision change.
# ----------------------------------------------------------------------------
def ref_forward(params, input_ids, cfg, mxu_dtype=jnp.bfloat16):
    B, T = input_ids.shape
    C, nh = cfg["n_embd"], cfg["n_head"]
    hd = C // nh
    f32 = jnp.float32

    def ln(x, w, b):
        mu = jnp.mean(x, axis=-1, keepdims=True)
        xc = x - mu
        var = jnp.mean(xc * xc, axis=-1, keepdims=True)
        return xc * jax.lax.rsqrt(var + EPS) * w + b

    def mdot(a, b):
        return jnp.dot(a.astype(mxu_dtype), b.astype(mxu_dtype),
                       preferred_element_type=f32)

    x = jnp.take(params["wte"], input_ids, axis=0) + params["wpe"][:T][None]
    causal = jnp.tril(jnp.ones((T, T), bool))
    for p in params["blocks"]:
        xn = ln(x, p["ln1_w"][0], p["ln1_b"][0])
        qkv = mdot(xn, p["w_qkv"]) + p["b_qkv"][0]
        q, k, v = jnp.split(qkv, 3, axis=-1)
        q = q * (1.0 / math.sqrt(hd))             # scale folded into q (as in kernel)
        q = q.reshape(B, T, nh, hd).transpose(0, 2, 1, 3).astype(mxu_dtype)
        k = k.reshape(B, T, nh, hd).transpose(0, 2, 1, 3).astype(mxu_dtype)
        v = v.reshape(B, T, nh, hd).transpose(0, 2, 1, 3).astype(mxu_dtype)
        att = jnp.einsum("bhqd,bhkd->bhqk", q, k, preferred_element_type=f32)
        att = jnp.where(causal[None, None], att, -jnp.inf)
        att = jax.nn.softmax(att, axis=-1)
        y = jnp.einsum("bhqk,bhkd->bhqd", att.astype(mxu_dtype), v,
                       preferred_element_type=f32)
        y = y.transpose(0, 2, 1, 3).reshape(B, T, C)
        x = x + mdot(y, p["w_proj"]) + p["b_proj"][0]
        xn = ln(x, p["ln2_w"][0], p["ln2_b"][0])
        h1 = jax.nn.gelu(mdot(xn, p["w_fc"]) + p["b_fc"][0], approximate=False)
        x = x + mdot(h1, p["w_mproj"]) + p["b_mproj"][0]
    x = ln(x, params["ln_f_w"][0], params["ln_f_b"][0])
    return mdot(x, params["w_head"])


# ----------------------------------------------------------------------------
if __name__ == "__main__":
    # lane-friendly toy config: C multiple of 128, V exercises the vocab tiling
    cfg = dict(vocab_size=4096, block_size=32, n_layer=2, n_head=4,
               n_embd=128, dropout=0.0)

    key = jax.random.PRNGKey(0)
    k_params, k_inputs = jax.random.split(key)
    params = init_params(k_params, cfg)

    B, T = 2, 16
    input_ids = jax.random.randint(k_inputs, (B, T), 0, cfg["vocab_size"],
                                   dtype=jnp.int32)

    (logits,) = simple_gpt_forward(params, input_ids, cfg)
    logits = jax.block_until_ready(logits)
    assert logits.shape == (B, T, cfg["vocab_size"])

    # tight check vs. matched-precision (bf16-MXU) reference
    ref_bf16 = jax.block_until_ready(ref_forward(params, input_ids, cfg,
                                                 mxu_dtype=jnp.bfloat16))
    np.testing.assert_allclose(np.asarray(logits), np.asarray(ref_bf16),
                               atol=5e-3, rtol=5e-3)
    # loose sanity check vs. full-f32 math (documents intentional bf16 trade-off)
    ref_f32 = jax.block_until_ready(ref_forward(params, input_ids, cfg,
                                                mxu_dtype=jnp.float32))
    np.testing.assert_allclose(np.asarray(logits), np.asarray(ref_f32),
                               atol=5e-2, rtol=5e-2)
    print("KERNEL_OK")
</pallas_src>

<mosaic_0001>
module attributes {stable_mosaic.version = 11 : i64} {
  func.func @_block_kernel(%arg0: i32, %arg1: memref<1x16x128xf32, #tpu.memory_space<vmem>>, %arg2: memref<1x128xf32, #tpu.memory_space<vmem>>, %arg3: memref<1x128xf32, #tpu.memory_space<vmem>>, %arg4: memref<128x384xbf16, #tpu.memory_space<vmem>>, %arg5: memref<1x384xf32, #tpu.memory_space<vmem>>, %arg6: memref<128x128xbf16, #tpu.memory_space<vmem>>, %arg7: memref<1x128xf32, #tpu.memory_space<vmem>>, %arg8: memref<1x128xf32, #tpu.memory_space<vmem>>, %arg9: memref<1x128xf32, #tpu.memory_space<vmem>>, %arg10: memref<128x512xbf16, #tpu.memory_space<vmem>>, %arg11: memref<1x512xf32, #tpu.memory_space<vmem>>, %arg12: memref<512x128xbf16, #tpu.memory_space<vmem>>, %arg13: memref<1x128xf32, #tpu.memory_space<vmem>>, %arg14: memref<1x16x128xf32, #tpu.memory_space<vmem>>) attributes {dimension_semantics = [#tpu.dimension_semantics<parallel>], iteration_bounds = array<i64: 2>, scalar_prefetch = 0 : i64, scratch_operands = 0 : i64, tpu.core_type = #tpu.core_type<tc>, window_params = [{transform_indices = @transform_0, window_bounds = array<i64: 1, 16, 128>}, {pipeline_mode = #tpu.pipeline_mode<synchronous>, transform_indices = @transform_1, window_bounds = array<i64: 1, 128>}, {pipeline_mode = #tpu.pipeline_mode<synchronous>, transform_indices = @transform_2, window_bounds = array<i64: 1, 128>}, {pipeline_mode = #tpu.pipeline_mode<synchronous>, transform_indices = @transform_3, window_bounds = array<i64: 128, 384>}, {pipeline_mode = #tpu.pipeline_mode<synchronous>, transform_indices = @transform_4, window_bounds = array<i64: 1, 384>}, {pipeline_mode = #tpu.pipeline_mode<synchronous>, transform_indices = @transform_5, window_bounds = array<i64: 128, 128>}, {pipeline_mode = #tpu.pipeline_mode<synchronous>, transform_indices = @transform_6, window_bounds = array<i64: 1, 128>}, {pipeline_mode = #tpu.pipeline_mode<synchronous>, transform_indices = @transform_7, window_bounds = array<i64: 1, 128>}, {pipeline_mode = #tpu.pipeline_mode<synchronous>, transform_indices = @transform_8, window_bounds = array<i64: 1, 128>}, {pipeline_mode = #tpu.pipeline_mode<synchronous>, transform_indices = @transform_9, window_bounds = array<i64: 128, 512>}, {pipeline_mode = #tpu.pipeline_mode<synchronous>, transform_indices = @transform_10, window_bounds = array<i64: 1, 512>}, {pipeline_mode = #tpu.pipeline_mode<synchronous>, transform_indices = @transform_11, window_bounds = array<i64: 512, 128>}, {pipeline_mode = #tpu.pipeline_mode<synchronous>, transform_indices = @transform_12, window_bounds = array<i64: 1, 128>}, {transform_indices = @transform_13, window_bounds = array<i64: 1, 16, 128>}]} {
    %c0 = arith.constant 0 : index
    %c0_0 = arith.constant 0 : index
    %c0_1 = arith.constant 0 : index
    %0 = vector.load %arg1[%c0, %c0_0, %c0_1] : memref<1x16x128xf32, #tpu.memory_space<vmem>>, vector<1x16x128xf32>
    %1 = vector.shape_cast %0 : vector<1x16x128xf32> to vector<16x128xf32>
    %c0_2 = arith.constant 0 : index
    %c0_3 = arith.constant 0 : index
    %2 = vector.load %arg2[%c0_2, %c0_3] : memref<1x128xf32, #tpu.memory_space<vmem>>, vector<1x128xf32>
    %3 = vector.shape_cast %2 : vector<1x128xf32> to vector<128xf32>
    %c0_4 = arith.constant 0 : index
    %c0_5 = arith.constant 0 : index
    %4 = vector.load %arg3[%c0_4, %c0_5] : memref<1x128xf32, #tpu.memory_space<vmem>>, vector<1x128xf32>
    %5 = vector.shape_cast %4 : vector<1x128xf32> to vector<128xf32>
    %cst = arith.constant dense<0.000000e+00> : vector<16xf32>
    %6 = vector.multi_reduction <add>, %1, %cst [1] : vector<16x128xf32> to vector<16xf32>
    %7 = vector.shape_cast %6 : vector<16xf32> to vector<16x1xf32>
    %cst_6 = arith.constant 1.280000e+02 : f32
    %8 = vector.broadcast %cst_6 : f32 to vector<16x1xf32>
    %9 = arith.divf %7, %8 : vector<16x1xf32>
    %10 = vector.broadcast %9 : vector<16x1xf32> to vector<16x128xf32>
    %11 = arith.subf %1, %10 : vector<16x128xf32>
    %12 = arith.mulf %11, %11 : vector<16x128xf32>
    %cst_7 = arith.constant dense<0.000000e+00> : vector<16xf32>
    %13 = vector.multi_reduction <add>, %12, %cst_7 [1] : vector<16x128xf32> to vector<16xf32>
    %14 = vector.shape_cast %13 : vector<16xf32> to vector<16x1xf32>
    %cst_8 = arith.constant 1.280000e+02 : f32
    %15 = vector.broadcast %cst_8 : f32 to vector<16x1xf32>
    %16 = arith.divf %14, %15 : vector<16x1xf32>
    %cst_9 = arith.constant 9.99999974E-6 : f32
    %17 = vector.broadcast %cst_9 : f32 to vector<16x1xf32>
    %18 = arith.addf %16, %17 : vector<16x1xf32>
    %19 = math.rsqrt %18 : vector<16x1xf32>
    %20 = vector.broadcast %19 : vector<16x1xf32> to vector<16x128xf32>
    %21 = arith.mulf %11, %20 : vector<16x128xf32>
    %22 = vector.shape_cast %3 : vector<128xf32> to vector<1x128xf32>
    %23 = vector.broadcast %22 : vector<1x128xf32> to vector<16x128xf32>
    %24 = arith.mulf %21, %23 : vector<16x128xf32>
    %25 = vector.shape_cast %5 : vector<128xf32> to vector<1x128xf32>
    %26 = vector.broadcast %25 : vector<1x128xf32> to vector<16x128xf32>
    %27 = arith.addf %24, %26 : vector<16x128xf32>
    %28 = arith.truncf %27 : vector<16x128xf32> to vector<16x128xbf16>
    %c0_10 = arith.constant 0 : index
    %c0_11 = arith.constant 0 : index
    %29 = vector.load %arg4[%c0_10, %c0_11] : memref<128x384xbf16, #tpu.memory_space<vmem>>, vector<128x384xbf16>
    %cst_12 = arith.constant dense<0.000000e+00> : vector<16x384xf32>
    %30 = tpu.matmul %28, %29, %cst_12 {dimension_numbers = #tpu.dot_dimension_numbers<[1], [0], [0], [1], [0, 0, 1, 1], [], []>} : vector<16x128xbf16>, vector<128x384xbf16>, vector<16x384xf32> -> vector<16x384xf32>
    %c0_13 = arith.constant 0 : index
    %c0_14 = arith.constant 0 : index
    %31 = vector.load %arg5[%c0_13, %c0_14] : memref<1x384xf32, #tpu.memory_space<vmem>>, vector<1x384xf32>
    %32 = vector.shape_cast %31 : vector<1x384xf32> to vector<384xf32>
    %33 = vector.shape_cast %32 : vector<384xf32> to vector<1x384xf32>
    %34 = vector.broadcast %33 : vector<1x384xf32> to vector<16x384xf32>
    %35 = arith.addf %30, %34 : vector<16x384xf32>
    %36 = tpu.iota {dimensions = array<i32: 0>} : vector<16x16xi32>
    %37 = tpu.iota {dimensions = array<i32: 1>} : vector<16x16xi32>
    %38 = arith.cmpi sle, %37, %36 : vector<16x16xi32>
    %cst_15 = arith.constant 0.000000e+00 : f32
    %39 = vector.broadcast %cst_15 : f32 to vector<16x128xf32>
    %40 = vector.extract_strided_slice %35 {offsets = [0, 0], sizes = [16, 32], strides = [1, 1]} : vector<16x384xf32> to vector<16x32xf32>
    %cst_16 = arith.constant 0.176776692 : f32
    %41 = vector.broadcast %cst_16 : f32 to vector<16x32xf32>
    %42 = arith.mulf %40, %41 : vector<16x32xf32>
    %43 = arith.truncf %42 : vector<16x32xf32> to vector<16x32xbf16>
    %44 = vector.extract_strided_slice %35 {offsets = [0, 128], sizes = [16, 32], strides = [1, 1]} : vector<16x384xf32> to vector<16x32xf32>
    %45 = arith.truncf %44 : vector<16x32xf32> to vector<16x32xbf16>
    %46 = vector.extract_strided_slice %35 {offsets = [0, 256], sizes = [16, 32], strides = [1, 1]} : vector<16x384xf32> to vector<16x32xf32>
    %47 = arith.truncf %46 : vector<16x32xf32> to vector<16x32xbf16>
    %cst_17 = arith.constant dense<0.000000e+00> : vector<16x16xf32>
    %48 = tpu.matmul %43, %45, %cst_17 {dimension_numbers = #tpu.dot_dimension_numbers<[1], [1], [0], [0], [0, 0, 1, 0], [], []>} : vector<16x32xbf16>, vector<16x32xbf16>, vector<16x16xf32> -> vector<16x16xf32>
    %cst_18 = arith.constant 0xFF800000 : f32
    %49 = vector.broadcast %cst_18 : f32 to vector<16x16xf32>
    %50 = arith.select %38, %48, %49 : vector<16x16xi1>, vector<16x16xf32>
    %cst_19 = arith.constant dense<0xFF800000> : vector<16xf32>
    %51 = vector.multi_reduction <maximumf>, %50, %cst_19 [1] : vector<16x16xf32> to vector<16xf32>
    %52 = vector.shape_cast %51 : vector<16xf32> to vector<16x1xf32>
    %53 = vector.broadcast %52 : vector<16x1xf32> to vector<16x16xf32>
    %54 = arith.subf %50, %53 : vector<16x16xf32>
    %55 = math.exp %54 : vector<16x16xf32>
    %cst_20 = arith.constant dense<0.000000e+00> : vector<16xf32>
    %56 = vector.multi_reduction <add>, %55, %cst_20 [1] : vector<16x16xf32> to vector<16xf32>
    %57 = vector.shape_cast %56 : vector<16xf32> to vector<16x1xf32>
    %58 = tpu.reciprocal %57 {approx = true} : vector<16x1xf32> -> vector<16x1xf32>
    %59 = vector.broadcast %58 : vector<16x1xf32> to vector<16x16xf32>
    %60 = arith.mulf %55, %59 : vector<16x16xf32>
    %61 = arith.truncf %60 : vector<16x16xf32> to vector<16x16xbf16>
    %cst_21 = arith.constant dense<0.000000e+00> : vector<16x32xf32>
    %62 = tpu.matmul %61, %47, %cst_21 {dimension_numbers = #tpu.dot_dimension_numbers<[1], [0], [0], [1], [0, 0, 1, 1], [], []>} : vector<16x16xbf16>, vector<16x32xbf16>, vector<16x32xf32> -> vector<16x32xf32>
    %63 = arith.truncf %62 : vector<16x32xf32> to vector<16x32xbf16>
    %c0_22 = arith.constant 0 : index
    %c0_23 = arith.constant 0 : index
    %64 = vector.load %arg6[%c0_22, %c0_23] : memref<128x128xbf16, #tpu.memory_space<vmem>>, vector<32x128xbf16>
    %cst_24 = arith.constant dense<0.000000e+00> : vector<16x128xf32>
    %65 = tpu.matmul %63, %64, %cst_24 {dimension_numbers = #tpu.dot_dimension_numbers<[1], [0], [0], [1], [0, 0, 1, 1], [], []>} : vector<16x32xbf16>, vector<32x128xbf16>, vector<16x128xf32> -> vector<16x128xf32>
    %66 = arith.addf %39, %65 : vector<16x128xf32>
    %67 = vector.extract_strided_slice %35 {offsets = [0, 32], sizes = [16, 32], strides = [1, 1]} : vector<16x384xf32> to vector<16x32xf32>
    %cst_25 = arith.constant 0.176776692 : f32
    %68 = vector.broadcast %cst_25 : f32 to vector<16x32xf32>
    %69 = arith.mulf %67, %68 : vector<16x32xf32>
    %70 = arith.truncf %69 : vector<16x32xf32> to vector<16x32xbf16>
    %71 = vector.extract_strided_slice %35 {offsets = [0, 160], sizes = [16, 32], strides = [1, 1]} : vector<16x384xf32> to vector<16x32xf32>
    %72 = arith.truncf %71 : vector<16x32xf32> to vector<16x32xbf16>
    %73 = vector.extract_strided_slice %35 {offsets = [0, 288], sizes = [16, 32], strides = [1, 1]} : vector<16x384xf32> to vector<16x32xf32>
    %74 = arith.truncf %73 : vector<16x32xf32> to vector<16x32xbf16>
    %cst_26 = arith.constant dense<0.000000e+00> : vector<16x16xf32>
    %75 = tpu.matmul %70, %72, %cst_26 {dimension_numbers = #tpu.dot_dimension_numbers<[1], [1], [0], [0], [0, 0, 1, 0], [], []>} : vector<16x32xbf16>, vector<16x32xbf16>, vector<16x16xf32> -> vector<16x16xf32>
    %cst_27 = arith.constant 0xFF800000 : f32
    %76 = vector.broadcast %cst_27 : f32 to vector<16x16xf32>
    %77 = arith.select %38, %75, %76 : vector<16x16xi1>, vector<16x16xf32>
    %cst_28 = arith.constant dense<0xFF800000> : vector<16xf32>
    %78 = vector.multi_reduction <maximumf>, %77, %cst_28 [1] : vector<16x16xf32> to vector<16xf32>
    %79 = vector.shape_cast %78 : vector<16xf32> to vector<16x1xf32>
    %80 = vector.broadcast %79 : vector<16x1xf32> to vector<16x16xf32>
    %81 = arith.subf %77, %80 : vector<16x16xf32>
    %82 = math.exp %81 : vector<16x16xf32>
    %cst_29 = arith.constant dense<0.000000e+00> : vector<16xf32>
    %83 = vector.multi_reduction <add>, %82, %cst_29 [1] : vector<16x16xf32> to vector<16xf32>
    %84 = vector.shape_cast %83 : vector<16xf32> to vector<16x1xf32>
    %85 = tpu.reciprocal %84 {approx = true} : vector<16x1xf32> -> vector<16x1xf32>
    %86 = vector.broadcast %85 : vector<16x1xf32> to vector<16x16xf32>
    %87 = arith.mulf %82, %86 : vector<16x16xf32>
    %88 = arith.truncf %87 : vector<16x16xf32> to vector<16x16xbf16>
    %cst_30 = arith.constant dense<0.000000e+00> : vector<16x32xf32>
    %89 = tpu.matmul %88, %74, %cst_30 {dimension_numbers = #tpu.dot_dimension_numbers<[1], [0], [0], [1], [0, 0, 1, 1], [], []>} : vector<16x16xbf16>, vector<16x32xbf16>, vector<16x32xf32> -> vector<16x32xf32>
    %90 = arith.truncf %89 : vector<16x32xf32> to vector<16x32xbf16>
    %c32 = arith.constant 32 : index
    %c0_31 = arith.constant 0 : index
    %91 = vector.load %arg6[%c32, %c0_31] : memref<128x128xbf16, #tpu.memory_space<vmem>>, vector<32x128xbf16>
    %cst_32 = arith.constant dense<0.000000e+00> : vector<16x128xf32>
    %92 = tpu.matmul %90, %91, %cst_32 {dimension_numbers = #tpu.dot_dimension_numbers<[1], [0], [0], [1], [0, 0, 1, 1], [], []>} : vector<16x32xbf16>, vector<32x128xbf16>, vector<16x128xf32> -> vector<16x128xf32>
    %93 = arith.addf %66, %92 : vector<16x128xf32>
    %94 = vector.extract_strided_slice %35 {offsets = [0, 64], sizes = [16, 32], strides = [1, 1]} : vector<16x384xf32> to vector<16x32xf32>
    %cst_33 = arith.constant 0.176776692 : f32
    %95 = vector.broadcast %cst_33 : f32 to vector<16x32xf32>
    %96 = arith.mulf %94, %95 : vector<16x32xf32>
    %97 = arith.truncf %96 : vector<16x32xf32> to vector<16x32xbf16>
    %98 = vector.extract_strided_slice %35 {offsets = [0, 192], sizes = [16, 32], strides = [1, 1]} : vector<16x384xf32> to vector<16x32xf32>
    %99 = arith.truncf %98 : vector<16x32xf32> to vector<16x32xbf16>
    %100 = vector.extract_strided_slice %35 {offsets = [0, 320], sizes = [16, 32], strides = [1, 1]} : vector<16x384xf32> to vector<16x32xf32>
    %101 = arith.truncf %100 : vector<16x32xf32> to vector<16x32xbf16>
    %cst_34 = arith.constant dense<0.000000e+00> : vector<16x16xf32>
    %102 = tpu.matmul %97, %99, %cst_34 {dimension_numbers = #tpu.dot_dimension_numbers<[1], [1], [0], [0], [0, 0, 1, 0], [], []>} : vector<16x32xbf16>, vector<16x32xbf16>, vector<16x16xf32> -> vector<16x16xf32>
    %cst_35 = arith.constant 0xFF800000 : f32
    %103 = vector.broadcast %cst_35 : f32 to vector<16x16xf32>
    %104 = arith.select %38, %102, %103 : vector<16x16xi1>, vector<16x16xf32>
    %cst_36 = arith.constant dense<0xFF800000> : vector<16xf32>
    %105 = vector.multi_reduction <maximumf>, %104, %cst_36 [1] : vector<16x16xf32> to vector<16xf32>
    %106 = vector.shape_cast %105 : vector<16xf32> to vector<16x1xf32>
    %107 = vector.broadcast %106 : vector<16x1xf32> to vector<16x16xf32>
    %108 = arith.subf %104, %107 : vector<16x16xf32>
    %109 = math.exp %108 : vector<16x16xf32>
    %cst_37 = arith.constant dense<0.000000e+00> : vector<16xf32>
    %110 = vector.multi_reduction <add>, %109, %cst_37 [1] : vector<16x16xf32> to vector<16xf32>
    %111 = vector.shape_cast %110 : vector<16xf32> to vector<16x1xf32>
    %112 = tpu.reciprocal %111 {approx = true} : vector<16x1xf32> -> vector<16x1xf32>
    %113 = vector.broadcast %112 : vector<16x1xf32> to vector<16x16xf32>
    %114 = arith.mulf %109, %113 : vector<16x16xf32>
    %115 = arith.truncf %114 : vector<16x16xf32> to vector<16x16xbf16>
    %cst_38 = arith.constant dense<0.000000e+00> : vector<16x32xf32>
    %116 = tpu.matmul %115, %101, %cst_38 {dimension_numbers = #tpu.dot_dimension_numbers<[1], [0], [0], [1], [0, 0, 1, 1], [], []>} : vector<16x16xbf16>, vector<16x32xbf16>, vector<16x32xf32> -> vector<16x32xf32>
    %117 = arith.truncf %116 : vector<16x32xf32> to vector<16x32xbf16>
    %c64 = arith.constant 64 : index
    %c0_39 = arith.constant 0 : index
    %118 = vector.load %arg6[%c64, %c0_39] : memref<128x128xbf16, #tpu.memory_space<vmem>>, vector<32x128xbf16>
    %cst_40 = arith.constant dense<0.000000e+00> : vector<16x128xf32>
    %119 = tpu.matmul %117, %118, %cst_40 {dimension_numbers = #tpu.dot_dimension_numbers<[1], [0], [0], [1], [0, 0, 1, 1], [], []>} : vector<16x32xbf16>, vector<32x128xbf16>, vector<16x128xf32> -> vector<16x128xf32>
    %120 = arith.addf %93, %119 : vector<16x128xf32>
    %121 = vector.extract_strided_slice %35 {offsets = [0, 96], sizes = [16, 32], strides = [1, 1]} : vector<16x384xf32> to vector<16x32xf32>
    %cst_41 = arith.constant 0.176776692 : f32
    %122 = vector.broadcast %cst_41 : f32 to vector<16x32xf32>
    %123 = arith.mulf %121, %122 : vector<16x32xf32>
    %124 = arith.truncf %123 : vector<16x32xf32> to vector<16x32xbf16>
    %125 = vector.extract_strided_slice %35 {offsets = [0, 224], sizes = [16, 32], strides = [1, 1]} : vector<16x384xf32> to vector<16x32xf32>
    %126 = arith.truncf %125 : vector<16x32xf32> to vector<16x32xbf16>
    %127 = vector.extract_strided_slice %35 {offsets = [0, 352], sizes = [16, 32], strides = [1, 1]} : vector<16x384xf32> to vector<16x32xf32>
    %128 = arith.truncf %127 : vector<16x32xf32> to vector<16x32xbf16>
    %cst_42 = arith.constant dense<0.000000e+00> : vector<16x16xf32>
    %129 = tpu.matmul %124, %126, %cst_42 {dimension_numbers = #tpu.dot_dimension_numbers<[1], [1], [0], [0], [0, 0, 1, 0], [], []>} : vector<16x32xbf16>, vector<16x32xbf16>, vector<16x16xf32> -> vector<16x16xf32>
    %cst_43 = arith.constant 0xFF800000 : f32
    %130 = vector.broadcast %cst_43 : f32 to vector<16x16xf32>
    %131 = arith.select %38, %129, %130 : vector<16x16xi1>, vector<16x16xf32>
    %cst_44 = arith.constant dense<0xFF800000> : vector<16xf32>
    %132 = vector.multi_reduction <maximumf>, %131, %cst_44 [1] : vector<16x16xf32> to vector<16xf32>
    %133 = vector.shape_cast %132 : vector<16xf32> to vector<16x1xf32>
    %134 = vector.broadcast %133 : vector<16x1xf32> to vector<16x16xf32>
    %135 = arith.subf %131, %134 : vector<16x16xf32>
    %136 = math.exp %135 : vector<16x16xf32>
    %cst_45 = arith.constant dense<0.000000e+00> : vector<16xf32>
    %137 = vector.multi_reduction <add>, %136, %cst_45 [1] : vector<16x16xf32> to vector<16xf32>
    %138 = vector.shape_cast %137 : vector<16xf32> to vector<16x1xf32>
    %139 = tpu.reciprocal %138 {approx = true} : vector<16x1xf32> -> vector<16x1xf32>
    %140 = vector.broadcast %139 : vector<16x1xf32> to vector<16x16xf32>
    %141 = arith.mulf %136, %140 : vector<16x16xf32>
    %142 = arith.truncf %141 : vector<16x16xf32> to vector<16x16xbf16>
    %cst_46 = arith.constant dense<0.000000e+00> : vector<16x32xf32>
    %143 = tpu.matmul %142, %128, %cst_46 {dimension_numbers = #tpu.dot_dimension_numbers<[1], [0], [0], [1], [0, 0, 1, 1], [], []>} : vector<16x16xbf16>, vector<16x32xbf16>, vector<16x32xf32> -> vector<16x32xf32>
    %144 = arith.truncf %143 : vector<16x32xf32> to vector<16x32xbf16>
    %c96 = arith.constant 96 : index
    %c0_47 = arith.constant 0 : index
    %145 = vector.load %arg6[%c96, %c0_47] : memref<128x128xbf16, #tpu.memory_space<vmem>>, vector<32x128xbf16>
    %cst_48 = arith.constant dense<0.000000e+00> : vector<16x128xf32>
    %146 = tpu.matmul %144, %145, %cst_48 {dimension_numbers = #tpu.dot_dimension_numbers<[1], [0], [0], [1], [0, 0, 1, 1], [], []>} : vector<16x32xbf16>, vector<32x128xbf16>, vector<16x128xf32> -> vector<16x128xf32>
    %147 = arith.addf %120, %146 : vector<16x128xf32>
    %148 = arith.addf %1, %147 : vector<16x128xf32>
    %c0_49 = arith.constant 0 : index
    %c0_50 = arith.constant 0 : index
    %149 = vector.load %arg7[%c0_49, %c0_50] : memref<1x128xf32, #tpu.memory_space<vmem>>, vector<1x128xf32>
    %150 = vector.shape_cast %149 : vector<1x128xf32> to vector<128xf32>
    %151 = vector.shape_cast %150 : vector<128xf32> to vector<1x128xf32>
    %152 = vector.broadcast %151 : vector<1x128xf32> to vector<16x128xf32>
    %153 = arith.addf %148, %152 : vector<16x128xf32>
    %c0_51 = arith.constant 0 : index
    %c0_52 = arith.constant 0 : index
    %154 = vector.load %arg8[%c0_51, %c0_52] : memref<1x128xf32, #tpu.memory_space<vmem>>, vector<1x128xf32>
    %155 = vector.shape_cast %154 : vector<1x128xf32> to vector<128xf32>
    %c0_53 = arith.constant 0 : index
    %c0_54 = arith.constant 0 : index
    %156 = vector.load %arg9[%c0_53, %c0_54] : memref<1x128xf32, #tpu.memory_space<vmem>>, vector<1x128xf32>
    %157 = vector.shape_cast %156 : vector<1x128xf32> to vector<128xf32>
    %cst_55 = arith.constant dense<0.000000e+00> : vector<16xf32>
    %158 = vector.multi_reduction <add>, %153, %cst_55 [1] : vector<16x128xf32> to vector<16xf32>
    %159 = vector.shape_cast %158 : vector<16xf32> to vector<16x1xf32>
    %cst_56 = arith.constant 1.280000e+02 : f32
    %160 = vector.broadcast %cst_56 : f32 to vector<16x1xf32>
    %161 = arith.divf %159, %160 : vector<16x1xf32>
    %162 = vector.broadcast %161 : vector<16x1xf32> to vector<16x128xf32>
    %163 = arith.subf %153, %162 : vector<16x128xf32>
    %164 = arith.mulf %163, %163 : vector<16x128xf32>
    %cst_57 = arith.constant dense<0.000000e+00> : vector<16xf32>
    %165 = vector.multi_reduction <add>, %164, %cst_57 [1] : vector<16x128xf32> to vector<16xf32>
    %166 = vector.shape_cast %165 : vector<16xf32> to vector<16x1xf32>
    %cst_58 = arith.constant 1.280000e+02 : f32
    %167 = vector.broadcast %cst_58 : f32 to vector<16x1xf32>
    %168 = arith.divf %166, %167 : vector<16x1xf32>
    %cst_59 = arith.constant 9.99999974E-6 : f32
    %169 = vector.broadcast %cst_59 : f32 to vector<16x1xf32>
    %170 = arith.addf %168, %169 : vector<16x1xf32>
    %171 = math.rsqrt %170 : vector<16x1xf32>
    %172 = vector.broadcast %171 : vector<16x1xf32> to vector<16x128xf32>
    %173 = arith.mulf %163, %172 : vector<16x128xf32>
    %174 = vector.shape_cast %155 : vector<128xf32> to vector<1x128xf32>
    %175 = vector.broadcast %174 : vector<1x128xf32> to vector<16x128xf32>
    %176 = arith.mulf %173, %175 : vector<16x128xf32>
    %177 = vector.shape_cast %157 : vector<128xf32> to vector<1x128xf32>
    %178 = vector.broadcast %177 : vector<1x128xf32> to vector<16x128xf32>
    %179 = arith.addf %176, %178 : vector<16x128xf32>
    %180 = arith.truncf %179 : vector<16x128xf32> to vector<16x128xbf16>
    %c0_60 = arith.constant 0 : index
    %c0_61 = arith.constant 0 : index
    %181 = vector.load %arg10[%c0_60, %c0_61] : memref<128x512xbf16, #tpu.memory_space<vmem>>, vector<128x512xbf16>
    %cst_62 = arith.constant dense<0.000000e+00> : vector<16x512xf32>
    %182 = tpu.matmul %180, %181, %cst_62 {dimension_numbers = #tpu.dot_dimension_numbers<[1], [0], [0], [1], [0, 0, 1, 1], [], []>} : vector<16x128xbf16>, vector<128x512xbf16>, vector<16x512xf32> -> vector<16x512xf32>
    %c0_63 = arith.constant 0 : index
    %c0_64 = arith.constant 0 : index
    %183 = vector.load %arg11[%c0_63, %c0_64] : memref<1x512xf32, #tpu.memory_space<vmem>>, vector<1x512xf32>
    %184 = vector.shape_cast %183 : vector<1x512xf32> to vector<512xf32>
    %185 = vector.shape_cast %184 : vector<512xf32> to vector<1x512xf32>
    %186 = vector.broadcast %185 : vector<1x512xf32> to vector<16x512xf32>
    %187 = arith.addf %182, %186 : vector<16x512xf32>
    %cst_65 = arith.constant 5.000000e-01 : f32
    %188 = vector.broadcast %cst_65 : f32 to vector<16x512xf32>
    %189 = arith.mulf %188, %187 : vector<16x512xf32>
    %cst_66 = arith.constant 0.707106769 : f32
    %190 = vector.broadcast %cst_66 : f32 to vector<16x512xf32>
    %191 = arith.mulf %187, %190 : vector<16x512xf32>
    %192 = math.absf %191 : vector<16x512xf32>
    %cst_67 = arith.constant 0.327591091 : f32
    %193 = vector.broadcast %cst_67 : f32 to vector<16x512xf32>
    %194 = arith.mulf %193, %192 : vector<16x512xf32>
    %cst_68 = arith.constant 1.000000e+00 : f32
    %195 = vector.broadcast %cst_68 : f32 to vector<16x512xf32>
    %196 = arith.addf %195, %194 : vector<16x512xf32>
    %cst_69 = arith.constant 1.000000e+00 : f32
    %197 = vector.broadcast %cst_69 : f32 to vector<16x512xf32>
    %198 = arith.divf %197, %196 : vector<16x512xf32>
    %cst_70 = arith.constant 1.06140542 : f32
    %199 = vector.broadcast %cst_70 : f32 to vector<16x512xf32>
    %200 = arith.mulf %199, %198 : vector<16x512xf32>
    %cst_71 = arith.constant -1.45315206 : f32
    %201 = vector.broadcast %cst_71 : f32 to vector<16x512xf32>
    %202 = arith.addf %200, %201 : vector<16x512xf32>
    %203 = arith.mulf %202, %198 : vector<16x512xf32>
    %cst_72 = arith.constant 1.42141378 : f32
    %204 = vector.broadcast %cst_72 : f32 to vector<16x512xf32>
    %205 = arith.addf %203, %204 : vector<16x512xf32>
    %206 = arith.mulf %205, %198 : vector<16x512xf32>
    %cst_73 = arith.constant -0.284496725 : f32
    %207 = vector.broadcast %cst_73 : f32 to vector<16x512xf32>
    %208 = arith.addf %206, %207 : vector<16x512xf32>
    %209 = arith.mulf %208, %198 : vector<16x512xf32>
    %cst_74 = arith.constant 0.254829586 : f32
    %210 = vector.broadcast %cst_74 : f32 to vector<16x512xf32>
    %211 = arith.addf %209, %210 : vector<16x512xf32>
    %212 = arith.mulf %211, %198 : vector<16x512xf32>
    %cst_75 = arith.constant 0.000000e+00 : f32
    %213 = vector.broadcast %cst_75 : f32 to vector<16x512xf32>
    %214 = arith.subf %213, %192 : vector<16x512xf32>
    %215 = arith.mulf %214, %192 : vector<16x512xf32>
    %216 = math.exp %215 : vector<16x512xf32>
    %217 = arith.mulf %212, %216 : vector<16x512xf32>
    %cst_76 = arith.constant 1.000000e+00 : f32
    %218 = vector.broadcast %cst_76 : f32 to vector<16x512xf32>
    %219 = arith.subf %218, %217 : vector<16x512xf32>
    %cst_77 = arith.constant 0.000000e+00 : f32
    %220 = vector.broadcast %cst_77 : f32 to vector<16x512xf32>
    %221 = arith.cmpf oge, %191, %220 : vector<16x512xf32>
    %cst_78 = arith.constant 0.000000e+00 : f32
    %222 = vector.broadcast %cst_78 : f32 to vector<16x512xf32>
    %223 = arith.subf %222, %219 : vector<16x512xf32>
    %224 = arith.select %221, %219, %223 : vector<16x512xi1>, vector<16x512xf32>
    %cst_79 = arith.constant 1.000000e+00 : f32
    %225 = vector.broadcast %cst_79 : f32 to vector<16x512xf32>
    %226 = arith.addf %225, %224 : vector<16x512xf32>
    %227 = arith.mulf %189, %226 : vector<16x512xf32>
    %228 = arith.truncf %227 : vector<16x512xf32> to vector<16x512xbf16>
    %c0_80 = arith.constant 0 : index
    %c0_81 = arith.constant 0 : index
    %229 = vector.load %arg12[%c0_80, %c0_81] : memref<512x128xbf16, #tpu.memory_space<vmem>>, vector<512x128xbf16>
    %cst_82 = arith.constant dense<0.000000e+00> : vector<16x128xf32>
    %230 = tpu.matmul %228, %229, %cst_82 {dimension_numbers = #tpu.dot_dimension_numbers<[1], [0], [0], [1], [0, 0, 1, 1], [], []>} : vector<16x512xbf16>, vector<512x128xbf16>, vector<16x128xf32> -> vector<16x128xf32>
    %c0_83 = arith.constant 0 : index
    %c0_84 = arith.constant 0 : index
    %231 = vector.load %arg13[%c0_83, %c0_84] : memref<1x128xf32, #tpu.memory_space<vmem>>, vector<1x128xf32>
    %232 = vector.shape_cast %231 : vector<1x128xf32> to vector<128xf32>
    %233 = vector.shape_cast %232 : vector<128xf32> to vector<1x128xf32>
    %234 = vector.broadcast %233 : vector<1x128xf32> to vector<16x128xf32>
    %235 = arith.addf %230, %234 : vector<16x128xf32>
    %236 = arith.addf %153, %235 : vector<16x128xf32>
    %c0_85 = arith.constant 0 : index
    %c0_86 = arith.constant 0 : index
    %c0_87 = arith.constant 0 : index
    %237 = vector.load %arg14[%c0_85, %c0_86, %c0_87] : memref<1x16x128xf32, #tpu.memory_space<vmem>>, vector<1x16x128xf32>
    %238 = vector.shape_cast %237 : vector<1x16x128xf32> to vector<16x128xf32>
    %239 = vector.shape_cast %236 : vector<16x128xf32> to vector<1x16x128xf32>
    tpu.vector_store %arg14[%c0_85, %c0_86, %c0_87], %239 {strides = array<i32>} : memref<1x16x128xf32, #tpu.memory_space<vmem>>, vector<1x16x128xf32>,
    return
  }
  func.func @transform_0(%arg0: i32) -> (i32, i32, i32) {
    %c0_i32 = arith.constant 0 : i32
    %c0_i32_0 = arith.constant 0 : i32
    %c0_i32_1 = arith.constant 0 : i32
    return %arg0, %c0_i32, %c0_i32_0 : i32, i32, i32
  }
  func.func @transform_1(%arg0: i32) -> (i32, i32) {
    %c0_i32 = arith.constant 0 : i32
    %c0_i32_0 = arith.constant 0 : i32
    %c0_i32_1 = arith.constant 0 : i32
    return %c0_i32, %c0_i32_0 : i32, i32
  }
  func.func @transform_2(%arg0: i32) -> (i32, i32) {
    %c0_i32 = arith.constant 0 : i32
    %c0_i32_0 = arith.constant 0 : i32
    %c0_i32_1 = arith.constant 0 : i32
    return %c0_i32, %c0_i32_0 : i32, i32
  }
  func.func @transform_3(%arg0: i32) -> (i32, i32) {
    %c0_i32 = arith.constant 0 : i32
    %c0_i32_0 = arith.constant 0 : i32
    %c0_i32_1 = arith.constant 0 : i32
    return %c0_i32, %c0_i32_0 : i32, i32
  }
  func.func @transform_4(%arg0: i32) -> (i32, i32) {
    %c0_i32 = arith.constant 0 : i32
    %c0_i32_0 = arith.constant 0 : i32
    %c0_i32_1 = arith.constant 0 : i32
    return %c0_i32, %c0_i32_0 : i32, i32
  }
  func.func @transform_5(%arg0: i32) -> (i32, i32) {
    %c0_i32 = arith.constant 0 : i32
    %c0_i32_0 = arith.constant 0 : i32
    %c0_i32_1 = arith.constant 0 : i32
    return %c0_i32, %c0_i32_0 : i32, i32
  }
  func.func @transform_6(%arg0: i32) -> (i32, i32) {
    %c0_i32 = arith.constant 0 : i32
    %c0_i32_0 = arith.constant 0 : i32
    %c0_i32_1 = arith.constant 0 : i32
    return %c0_i32, %c0_i32_0 : i32, i32
  }
  func.func @transform_7(%arg0: i32) -> (i32, i32) {
    %c0_i32 = arith.constant 0 : i32
    %c0_i32_0 = arith.constant 0 : i32
    %c0_i32_1 = arith.constant 0 : i32
    return %c0_i32, %c0_i32_0 : i32, i32
  }
  func.func @transform_8(%arg0: i32) -> (i32, i32) {
    %c0_i32 = arith.constant 0 : i32
    %c0_i32_0 = arith.constant 0 : i32
    %c0_i32_1 = arith.constant 0 : i32
    return %c0_i32, %c0_i32_0 : i32, i32
  }
  func.func @transform_9(%arg0: i32) -> (i32, i32) {
    %c0_i32 = arith.constant 0 : i32
    %c0_i32_0 = arith.constant 0 : i32
    %c0_i32_1 = arith.constant 0 : i32
    return %c0_i32, %c0_i32_0 : i32, i32
  }
  func.func @transform_10(%arg0: i32) -> (i32, i32) {
    %c0_i32 = arith.constant 0 : i32
    %c0_i32_0 = arith.constant 0 : i32
    %c0_i32_1 = arith.constant 0 : i32
    return %c0_i32, %c0_i32_0 : i32, i32
  }
  func.func @transform_11(%arg0: i32) -> (i32, i32) {
    %c0_i32 = arith.constant 0 : i32
    %c0_i32_0 = arith.constant 0 : i32
    %c0_i32_1 = arith.constant 0 : i32
    return %c0_i32, %c0_i32_0 : i32, i32
  }
  func.func @transform_12(%arg0: i32) -> (i32, i32) {
    %c0_i32 = arith.constant 0 : i32
    %c0_i32_0 = arith.constant 0 : i32
    %c0_i32_1 = arith.constant 0 : i32
    return %c0_i32, %c0_i32_0 : i32, i32
  }
  func.func @transform_13(%arg0: i32) -> (i32, i32, i32) {
    %c0_i32 = arith.constant 0 : i32
    %c0_i32_0 = arith.constant 0 : i32
    %c0_i32_1 = arith.constant 0 : i32
    return %arg0, %c0_i32, %c0_i32_0 : i32, i32, i32
  }
}

</mosaic_0001>

<bundles_post_ra>
// kernel: tpu_custom_call.1
= control target key start
LH: loop header
LB: loop body
LE: loop exit
PB: predicated region body
PF: predicated region fallthrough
CT: control target
= control target key end

     0   :  { %s4284_s0 = inlined_call_operand.hbm [shape: f32[2,16,128], index: 0, kind: input, shape index: {}]   ;;  %s4285_s1 = inlined_call_operand.hbm [shape: f32[1,128], index: 1, kind: input, shape index: {}]   ;;  %s4286_s2 = inlined_call_operand.hbm [shape: f32[1,128], index: 2, kind: input, shape index: {}]   ;;  %s4287_s3 = inlined_call_operand.hbm [shape: bf16[128,384], index: 3, kind: input, shape index: {}]   ;;  %s4288_s4 = inlined_call_operand.vmem [shape: f32[1,384], index: 4, kind: input, shape index: {}]   ;;  %s4289_s5 = inlined_call_operand.hbm [shape: bf16[128,128], index: 5, kind: input, shape index: {}]   ;;  %s4290_s6 = inlined_call_operand.hbm [shape: f32[1,128], index: 6, kind: input, shape index: {}]   ;;  %s4291_s7 = inlined_call_operand.hbm [shape: f32[1,128], index: 7, kind: input, shape index: {}]   ;;  %s4292_s8 = inlined_call_operand.hbm [shape: f32[1,128], index: 8, kind: input, shape index: {}]   ;;  %s4293_s9 = inlined_call_operand.hbm [shape: bf16[128,512], index: 9, kind: input, shape index: {}]   ;;  %s4294_s10 = inlined_call_operand.vmem [shape: f32[1,512], index: 10, kind: input, shape index: {}]   ;;  %s4295_s11 = inlined_call_operand.hbm [shape: bf16[512,128], index: 11, kind: input, shape index: {}]   ;;  %s4296_s12 = inlined_call_operand.vmem [shape: f32[1,128], index: 12, kind: input, shape index: {}]   ;;  %s4297_s13 = inlined_call_operand.hbm [shape: f32[2,16,128], index: 13, kind: output, shape index: {}]  }
   0x1   :  { %4299 = sst [smem:[#allocation27_spill]] %s4285_s1 }
   0x2   :  { %4300 = sst [smem:[#allocation28_spill]] %s4286_s2 }
   0x3   :  { %4301 = sst [smem:[#allocation29_spill]] %s4287_s3 }
   0x4   :  { %4302 = sst [smem:[#allocation30_spill]] %s4289_s5 }
   0x5   :  { %4303 = sst [smem:[#allocation31_spill]] %s4290_s6 }
   0x6   :  { %4304 = sst [smem:[#allocation32_spill]] %s4294_s10 }
   0x7   :  { %4305 = sst [smem:[#allocation33_spill]] %s4296_s12 }
   0x8   :  { %4306 = sst [smem:[#allocation34_spill]] %s4297_s13 }
   0x9   :  { %18 = vsyncpa [#allocation3], 0 }
   0xa   :  { %20 = vsyncpa [#allocation3 + $0x1], 0 }
   0xb   :  { %21 = vsyncpa [#allocation6], 0 }
   0xc   :  { %22 = vsyncpa [#allocation9], 0 }
   0xd   :  { %23 = vsyncpa [#allocation12], 0 }
   0xe   :  { %24 = vsyncpa [#allocation15], 0 }
   0xf   :  { %25 = vsyncpa [#allocation18], 0 }
  0x10   :  { %26 = vsyncpa [#allocation4], 0 }
  0x11   :  { %28 = vsyncpa [#allocation4 + $0x1], 0  ;;  %s3675_s25 = smov 0   ;;  %s3677_s26 = smov 0  }
  0x12   :  { %s3679_s27 = smov 0   ;;  %s3681_s28 = smov 0  }
  0x13 LB: > { %s4307_s1 = sld [smem:[#allocation27_spill]]  ;;  %s3699_s15 = sadd.s32 4294967295, %s3580_s28   ;;  %s3580_s28 = sphi %s3681_s28, %s4326_s28   ;;  %s3576_s27 = sphi %s3679_s27, %s4325_s27   ;;  %s3572_s26 = sphi %s3677_s26, %s4324_s26   ;;  %s3568_s25 = sphi %s3675_s25, %s4323_s25  }
  0x14   : > { %p2438_p0 = scmp.ge.s32.totalorder %s3580_s28, 1  ;;  %p55_p1 = scmp.eq.s32.totalorder %s3699_s15, 0 }
  0x15   : > { %p343_p2 = scmp.lt.s32.totalorder %s3580_s28, 3  ;;  %s3582_s17 = smov [#allocation5]  }
  0x16   : > { %s357_s18 = sshll.u32 %s3582_s17, 4  ;;  %s4309_s3 = sld [smem:[#allocation29_spill]]  ;;  %s358_s18 = int_to_ptr.vmem [resolvable:$true] %s357_s18 }
  0x17   : > { %p3704_p3 = pnand %p2438_p0, %p343_p2  ;;  %s3583_s23 = smov [#allocation8]  }
  0x18   : > { %s380_s24 = sshll.u32 %s3583_s23, 4  ;;  %s3584_s29 = smov 192   ;;  %s381_s24 = int_to_ptr.vmem [resolvable:$true] %s380_s24 }
  0x19   : > { %s355_s14 = sshll.u32 %s4307_s1, 4  ;;  %p3003_p5 = pneg %p3704_p3  ;;  %s356_s14 = int_to_ptr.hbm [resolvable:$true] %s355_s14 }
  0x1a   : > { %s3585_s30 = smov 12   ;;  %s4311_s6 = sld [smem:[#allocation31_spill]] }
  0x1b   : > { %p3716_p6 = pnand %p3003_p5, %p55_p1  ;;  %s3586_s1 = smov [#allocation11]  }
  0x1c   : > { %s378_s21 = sshll.u32 %s4309_s3, 4  ;;  %s412_s3 = sshll.u32 %s3586_s1, 4  ;;  %s379_s21 = int_to_ptr.hbm [resolvable:$true] %s378_s21  ;;  %s413_s3 = int_to_ptr.vmem [resolvable:$true] %s412_s3 }
  0x1d   : > { %3006 = dma.hbm_to_vmem [thread:$0]  (!%p3716_p6), %s356_s14, 16, %s358_s18, [#allocation6]  }
  0x1e   : > { %3012 = dma.hbm_to_vmem [thread:$0]  (!%p3716_p6), %s379_s21, 3072, %s381_s24, [#allocation9], %s3584_s29, %s3584_s29, %s3585_s30  }
  0x1f   : > { %s434_s23 = sshll.u32 %s4292_s8, 4  ;;  %s3587_s14 = smov [#allocation14]   ;;  %s435_s23 = int_to_ptr.hbm [resolvable:$true] %s434_s23 }
  0x20   : > { %s410_s20 = sshll.u32 %s4311_s6, 4  ;;  %s436_s18 = sshll.u32 %s3587_s14, 4  ;;  %s411_s20 = int_to_ptr.hbm [resolvable:$true] %s410_s20  ;;  %s437_s18 = int_to_ptr.vmem [resolvable:$true] %s436_s18 }
  0x21   : > { %3018 = dma.hbm_to_vmem [thread:$0]  (!%p3716_p6), %s411_s20, 16, %s413_s3, [#allocation12]  }
  0x22   : > { %s4312_s2 = sld [smem:[#allocation28_spill]]  ;;  %s3588_s12 = smov [#allocation7]  }
  0x23   : > { %3024 = dma.hbm_to_vmem [thread:$0]  (!%p3716_p6), %s435_s23, 16, %s437_s18, [#allocation15]  }
  0x24   : > { %s4313_s5 = sld [smem:[#allocation30_spill]]  ;;  %s369_s13 = sshll.u32 %s3588_s12, 4  ;;  %s370_s13 = int_to_ptr.vmem [resolvable:$true] %s369_s13 }
  0x25   : > { %s3589_s3 = smov [#allocation10]   ;;  %s3590_s10 = smov 64  }
  0x26   : > { %s397_s17 = sshll.u32 %s3589_s3, 4  ;;  %s3591_s19 = smov 4   ;;  %s398_s17 = int_to_ptr.vmem [resolvable:$true] %s397_s17 }
  0x27   : > { %s422_s14 = sshll.u32 %s4291_s7, 4  ;;  %s3592_s18 = smov [#allocation13]   ;;  %s423_s14 = int_to_ptr.hbm [resolvable:$true] %s422_s14 }
  0x28   : > { %s367_s24 = sshll.u32 %s4312_s2, 4  ;;  %s424_s21 = sshll.u32 %s3592_s18, 4  ;;  %s368_s24 = int_to_ptr.hbm [resolvable:$true] %s367_s24  ;;  %s425_s21 = int_to_ptr.vmem [resolvable:$true] %s424_s21 }
  0x29   : > { %3009 = dma.hbm_to_vmem [thread:$0]  (!%p3716_p6), %s368_s24, 16, %s370_s13, [#allocation6]  }
  0x2a   : > { %s395_s30 = sshll.u32 %s4313_s5, 4  ;;  %s445_s24 = sshll.u32 %s4293_s9, 4  ;;  %s396_s30 = int_to_ptr.hbm [resolvable:$true] %s395_s30  ;;  %s446_s24 = int_to_ptr.hbm [resolvable:$true] %s445_s24 }
  0x2b   : > { %3015 = dma.hbm_to_vmem [thread:$0]  (!%p3716_p6), %s396_s30, 1024, %s398_s17, [#allocation9], %s3590_s10, %s3590_s10, %s3591_s19  }
  0x2c   : > { %3021 = dma.hbm_to_vmem [thread:$0]  (!%p3716_p6), %s423_s14, 16, %s425_s21, [#allocation12]  }
  0x2d   : > { %s3593_s30 = smov [#allocation16]   ;;  %s3594_s13 = smov 256  }
  0x2e   : > { %s447_s12 = sshll.u32 %s3593_s30, 4  ;;  %s3595_s3 = smov 16   ;;  %s448_s12 = int_to_ptr.vmem [resolvable:$true] %s447_s12 }
  0x2f   : > { %3027 = dma.hbm_to_vmem [thread:$0]  (!%p3716_p6), %s446_s24, 4096, %s448_s12, [#allocation15], %s3594_s13, %s3594_s13, %s3595_s3  }
  0x30   : > { %s462_s23 = sshll.u32 %s4295_s11, 4  ;;  %s3596_s14 = smov [#allocation17]   ;;  %s463_s23 = int_to_ptr.hbm [resolvable:$true] %s462_s23 }
  0x31   : > { %s464_s18 = sshll.u32 %s3596_s14, 4  ;;  %s2437_s21 = sadd.s32 4294967294, %s3580_s28   ;;  %s465_s18 = int_to_ptr.vmem [resolvable:$true] %s464_s18 }
  0x32   : > { %3030 = dma.hbm_to_vmem [thread:$0]  (!%p3716_p6), %s463_s23, 4096, %s465_s18, [#allocation18], %s3590_s10, %s3590_s10, %s3591_s19  }
  0x33   : > { %s3761_s1 = sadd.s32 1, %s3580_s28   ;;  %s41_s29 = sadd.s32 1, %s3576_s27 }
  0x34   : > { %s38_s24 = ssub.s32 %s3580_s28, %s3761_s1  ;;  %p48_p7 = scmp.ne.s32.totalorder %s3576_s27, %s3572_s26 }
  0x35   : > { %p39_p8 = scmp.eq.s32.totalorder %s38_s24, 0  ;;  %p49_p9 = scmp.eq.s32.totalorder %s3580_s28, 0 }
  0x36   : > { %p54_p10 = scmp.ne.s32.totalorder %s3572_s26, %s3568_s25  ;;  %p330_p11 = scmp.eq.s32.totalorder %s3699_s15, 1 }
  0x37   : > { %s3773_s30 = scalar_select %p39_p8, %s3576_s27, %s41_s29  }
  0x38   : > { %p3775_p12 = por %p49_p9, %p48_p7  ;;  %p3781_p13 = por %p55_p1, %p54_p10 }
  0x39   : > { %p3785_p0 = por %p330_p11, %p48_p7  ;;  %p336_p2 = scmp.eq.s32.totalorder %s2437_s21, 1 }
  0x3a   : > { %p3048_p5 = scmp.lt.s32.totalorder %s3580_s28, 2  ;;  %s481_s19 = sand.u32 1, %s3576_s27  }
  0x3b   : > { %p3791_p6 = por %p336_p2, %p54_p10  ;;  %s2449_s3 = sshll.u32 %s481_s19, 4 }
  0x3c   : > { %s2865_s17 = sshll.u32 %s3580_s28, 4  ;;  %s485_s29 = scalar_lea.vmem [#allocation2], %s2449_s3 }
  0x3d   : > { %s490_s14 = scalar_lea.hbm %s4284_s0, %s2865_s17  ;;  %s493_s24 = sshll.u32 %s485_s29, 4  ;;  %s494_s24 = int_to_ptr.vmem [resolvable:$true] %s493_s24 }
  0x3e   : > { %s491_s18 = sshll.u32 %s490_s14, 4  ;;  %p3801_p7 = pnand %p3048_p5, %p3775_p12  ;;  %s492_s18 = int_to_ptr.hbm [resolvable:$true] %s491_s18 }
  0x3f   : > { %s482_s2 = scalar_lea.sflag [#allocation3], %s481_s19  ;;  %s3464_s5 = sshra.s32 %s492_s18, 4  ;;  %s3465_s5 = int_to_ptr.hbm [resolvable:$true] %s3464_s5 }
  0x40   : > { %s3466_s6 = scalar_lea.hbm %s3465_s5, 16  ;;  %p3468_p9 = pneg %p3801_p7 }
  0x41   : > { %p3467_p8 = scmp.ne.s32.totalorder %s3465_s5, %s3466_s6  ;;  %s3471_s20 = scalar_lea.hbm %s4284_s0, 32 }
  0x42   : > { %p3472_p12 = scmp.lt.s32.totalorder %s3465_s5, %s4284_s0  ;;  %p3473_p2 = scmp.lt.s32.totalorder %s3471_s20, %s3466_s6 }
  0x43   : > { %p3469_p10 = pnand %p3468_p9, %p3467_p8 }
  0x44   : > { %p3474_p5 = por %p3473_p2, %p3472_p12 }
  0x45   : > { %p3470_p11 = pneg %p3469_p10 }
  0x47   : > { %p3475_p4 = pnand %p3474_p5, %p3470_p11 }
  0x49   : > { %3478 = shalt.err (!%p3475_p4)
}
  0x4a   : > { %s3597_s19 = smov 128   ;;  %s3598_s14 = smov 8  }
  0x4b   : > { %3034 = dma.hbm_to_vmem [thread:$0]  (!%p3801_p7), %s492_s18, 256, %s494_s24, %s482_s2, %s3597_s19, %s3597_s19, %s3598_s14  }
  0x4c   : > { %505 = sbr.rel (%p3704_p3) target bundleno = 2413 (0x96d), region = 72  ;;  %s3818_s29 = sand.u32 (!%p3704_p3), 1, %s3572_s26  }
  0x4d   : > { %s2453_s5 = sshll.u32 (!%p3704_p3), %s3818_s29, 4  ;;  %s508_s6 = scalar_lea.sflag (!%p3704_p3), [#allocation3], %s3818_s29 }
  0x4e   : > { %s511_s17 = scalar_lea.vmem (!%p3704_p3), [#allocation2], %s2453_s5 }
  0x51   : > { %3539 = dma.done.wait (%p3781_p13), %s508_s6, 256  }
  0x52   : > { %3541 = vsyncadd (%p3781_p13), %s508_s6, 4294967040 }
  0x53   : > { %3543 = dma.done.wait (%p55_p1), [#allocation6], 32  }
  0x54   : > { %3545 = vsyncadd (%p55_p1), [#allocation6], 4294967264 }
  0x55   : > { %3547 = dma.done.wait (%p55_p1), [#allocation9], 4096  }
  0x56   : > { %3549 = vsyncadd (%p55_p1), [#allocation9], 4294963200 }
  0x57   : > { %3551 = dma.done.wait (%p55_p1), [#allocation12], 32  }
  0x58   : > { %3553 = vsyncadd (%p55_p1), [#allocation12], 4294967264 }
  0x59   : > { %3555 = dma.done.wait (%p55_p1), [#allocation15], 4112  }
  0x5a   : > { %3557 = vsyncadd (%p55_p1), [#allocation15], 4294963184 }
  0x5b   : > { %3559 = dma.done.wait (%p55_p1), [#allocation18], 4096  }
  0x5c   : > { %3561 = vsyncadd (%p55_p1), [#allocation18], 4294963200  ;;  %v3848_v0 = vld [vmem:[%s511_s17] sm:$0xff]  ;;  %v3851_v1 = vld [vmem:[%s511_s17 + $0x8] sm:$0xff]  ;;  %v3599_v2 = vmov 128.0   ;;  %vm885_vm7 = vcmask 261120  }
  0x5d   : > { %605 = vadd.xlane.f32.xlu0 %v3848_v0  ;;  %3120 = vrcp.f32 %v3599_v2  ;;  %v2550_v17 = vld [vmem:[#allocation8 + $0xa8] sm:$0xf]  ;;  %v2888_v18 = vld [vmem:[#allocation8 + $0xb0] sm:$0xf0]  ;;  %v2887_v19 = vld [vmem:[#allocation8 + $0xac] sm:$0xf] }
  0x5e   : > { %v2551_v20 = vor.u32 %v2888_v18, %v2550_v17  ;;  %v2552_v21 = vld [vmem:[#allocation8 + $0xb4] sm:$0xf0]  ;;  %v2558_v22 = vld [vmem:[#allocation8 + $0xb0] sm:$0xf]  ;;  %v2889_v23 = vld [vmem:[#allocation8 + $0xb8] sm:$0xf0] }
  0x5f   : > { %v2555_v24 = vor.u32 %v2887_v19, %v2552_v21  ;;  %v2559_v25 = vor.u32 %v2889_v23, %v2558_v22  ;;  %v2538_v26 = vld [vmem:[#allocation8 + $0x90] sm:$0xf]  ;;  %v2885_v27 = vld [vmem:[#allocation8 + $0x98] sm:$0xf0]  ;;  %v2884_v28 = vld [vmem:[#allocation8 + $0x94] sm:$0xf] }
  0x60   : > { %831 = vmatpush.bf16.msra.mxu0 %v2551_v20  ;;  %v2539_v29 = vor.u32 %v2885_v27, %v2538_v26  ;;  %v2540_v30 = vld [vmem:[#allocation8 + $0x9c] sm:$0xf0]  ;;  %v2546_v31 = vld [vmem:[#allocation8 + $0x98] sm:$0xf]  ;;  %v2886_v32 = vld [vmem:[#allocation8 + $0xa0] sm:$0xf0] }
  0x61   : > { %845 = vmatpush.bf16.msra.mxu1 %v2555_v24  ;;  %859 = vmatpush.bf16.msra.mxu2 %v2559_v25  ;;  %v2543_v33 = vor.u32 %v2884_v28, %v2540_v30  ;;  %v2547_v34 = vor.u32 %v2886_v32, %v2546_v31  ;;  %v2526_v35 = vld [vmem:[#allocation8 + $0x78] sm:$0xf]  ;;  %v2882_v36 = vld [vmem:[#allocation8 + $0x80] sm:$0xf0]  ;;  %v2881_v37 = vld [vmem:[#allocation8 + $0x7c] sm:$0xf] }
  0x62   : > { %v2527_v38 = vor.u32 %v2882_v36, %v2526_v35  ;;  %v2528_v39 = vld [vmem:[#allocation8 + $0x84] sm:$0xf0]  ;;  %v2534_v40 = vld [vmem:[#allocation8 + $0x80] sm:$0xf]  ;;  %v2883_v41 = vld [vmem:[#allocation8 + $0x88] sm:$0xf0] }
  0x63   : > { %v3121_v3 = vpop.eup %3120  ;;  %v2531_v42 = vor.u32 %v2881_v37, %v2528_v39  ;;  %v2535_v43 = vor.u32 %v2883_v41, %v2534_v40  ;;  %v2514_v44 = vld [vmem:[#allocation8 + $0x60] sm:$0xf]  ;;  %v2879_v45 = vld [vmem:[#allocation8 + $0x68] sm:$0xf0]  ;;  %v2878_v46 = vld [vmem:[#allocation8 + $0x64] sm:$0xf] }
  0x64   : > { %v610_v4 = vmul.f32 128.0, %v3121_v3  ;;  %vm614_vm0 = vweird.f32 %v3121_v3  ;;  %832 = vmatpush.bf16.msra.mxu0 %v2539_v29  ;;  %v2515_v47 = vor.u32 %v2879_v45, %v2514_v44  ;;  %v2516_v48 = vld [vmem:[#allocation8 + $0x6c] sm:$0xf0]  ;;  %v2522_v49 = vld [vmem:[#allocation8 + $0x68] sm:$0xf]  ;;  %vm908_vm9 = vcmask 130048  }
  0x65   : > { %607 = vadd.xlane.f32.xlu0 %v3851_v1  ;;  %846 = vmatpush.bf16.msra.mxu1 %v2543_v33  ;;  %v2880_v50 = vld [vmem:[#allocation8 + $0x70] sm:$0xf0]  ;;  %v2519_v51 = vor.u32 %v2878_v46, %v2516_v48  ;;  %v2502_v53 = vld [vmem:[#allocation8 + $0x48] sm:$0xf]  ;;  %v2875_v55 = vld [vmem:[#allocation8 + $0x4c] sm:$0xf] }
  0x66   : > { %v611_v5 = vsub.f32 1.0, %v610_v4  ;;  %860 = vmatpush.bf16.msra.mxu2 %v2547_v34  ;;  %v2523_v52 = vor.u32 %v2880_v50, %v2522_v49  ;;  %v2876_v54 = vld [vmem:[#allocation8 + $0x50] sm:$0xf0]  ;;  %v2504_v57 = vld [vmem:[#allocation8 + $0x54] sm:$0xf0]  ;;  %s3600_s22 = smov 96  }
  0x67   : > { %v2503_v56 = vor.u32 %v2876_v54, %v2502_v53  ;;  %v2510_v58 = vld [vmem:[#allocation8 + $0x50] sm:$0xf]  ;;  %v2877_v59 = vld [vmem:[#allocation8 + $0x58] sm:$0xf0]  ;;  %v2507_v60 = vor.u32 %v2875_v55, %v2504_v57  ;;  %v2872_v2 = vld [vmem:[#allocation8 + $0x34] sm:$0xf] }
  0x68   : > { %v612_v6 = vmul.f32 %v3121_v3, %v611_v5  ;;  %833 = vmatpush.bf16.msra.mxu0 %v2527_v38  ;;  %v2511_v61 = vor.u32 %v2877_v59, %v2510_v58  ;;  %v2490_v62 = vld [vmem:[#allocation8 + $0x30] sm:$0xf]  ;;  %v2873_v63 = vld [vmem:[#allocation8 + $0x38] sm:$0xf0]  ;;  %v2492_v4 = vld [vmem:[#allocation8 + $0x3c] sm:$0xf0] }
  0x69   : > { %847 = vmatpush.bf16.msra.mxu1 %v2531_v42  ;;  %v2498_v5 = vld [vmem:[#allocation8 + $0x38] sm:$0xf]  ;;  %v2486_v17 = vld [vmem:[#allocation8 + $0x20] sm:$0xf]  ;;  %v2871_v18 = vld [vmem:[#allocation8 + $0x28] sm:$0xf0] }
  0x6a   : > { %v613_v7 = vadd.f32 %v3121_v3, %v612_v6  ;;  %861 = vmatpush.bf16.msra.mxu2 %v2535_v43  ;;  %v2874_v6 = vld [vmem:[#allocation8 + $0x40] sm:$0xf0]  ;;  %v2487_v20 = vor.u32 %v2871_v18, %v2486_v17  ;;  %v2466_v21 = vld [vmem:[#allocation8] sm:$0xf]  ;;  %v2867_v22 = vld [vmem:[#allocation8 + $0x8] sm:$0xf0] }
  0x6b   : > { %v2866_v23 = vld [vmem:[#allocation8 + $0x4] sm:$0xf]  ;;  %v2467_v25 = vor.u32 %v2867_v22, %v2466_v21  ;;  %v2468_v26 = vld [vmem:[#allocation8 + $0xc] sm:$0xf0]  ;;  %v2474_v27 = vld [vmem:[#allocation8 + $0x8] sm:$0xf] }
  0x6c   : > { %v3854_v8 = vsel %vm614_vm0, %v3121_v3, %v613_v7  ;;  %834 = vmatpush.bf16.msra.mxu0 %v2515_v47  ;;  %v2491_v3 = vor.u32 %v2873_v63, %v2490_v62  ;;  %v2495_v7 = vor.u32 %v2872_v2, %v2492_v4  ;;  %v2868_v28 = vld [vmem:[#allocation8 + $0x10] sm:$0xf0]  ;;  %v2471_v30 = vor.u32 %v2866_v23, %v2468_v26  ;;  %v3114_v49 = vld [vmem:[#allocation5] ss:$0 sm:$0xff]  ;;  %v3115_v54 = vld [vmem:[#allocation7] ss:$0 sm:$0xff] }
  0x6d   : > { %848 = vmatpush.bf16.msra.mxu1 %v2519_v51  ;;  %v2475_v31 = vor.u32 %v2868_v28, %v2474_v27  ;;  %s3601_s18 = smov 64   ;;  %s3602_s24 = smov 32  }
  0x6e   : > { %862 = vmatpush.bf16.msra.mxu2 %v2523_v52  ;;  %s4319_s20 = sld [smem:[#allocation32_spill]]  ;;  %s2962_s14 = sshll.u32 %s3699_s15, 4 }
  0x6f   : > { %s4320_s19 = sld [smem:[#allocation33_spill]]  ;;  %s599_s6 = scalar_lea.vmem [#allocation19], %s2453_s5 }
  0x70   : > { %835 = vmatpush.bf16.msra.mxu0 %v2503_v56  ;;  %s4321_s16 = sld [smem:[#allocation34_spill]]  ;;  %s2263_s15 = scalar_lea.sflag [#allocation4], %s3818_s29 }
  0x71   : > { %849 = vmatpush.bf16.msra.mxu1 %v2507_v60 }
  0x72   : > { %863 = vmatpush.bf16.msra.mxu2 %v2511_v61 }
  0x74   : > { %836 = vmatpush.bf16.msra.mxu0 %v2491_v3 }
  0x75   : > { %850 = vmatpush.bf16.msra.mxu1 %v2495_v7 }
  0x76   : > { %s3514_s23 = scalar_lea.hbm %s4321_s16, 32 }
  0xd0   : > { %v606_v9 = vpop.xlane.xlu0 %605 }
  0xd1   : > { %v616_v10 = vmul.f32 %v3854_v8, %v606_v9  ;;  %v2499_v9 = vor.u32 %v2874_v6, %v2498_v5 }
  0xd3   : > { %v3858_v11 = vsub.f32 %v3848_v0, %v616_v10  ;;  %864 = vmatpush.bf16.msra.mxu2 %v2499_v9  ;;  %v2478_v10 = vld [vmem:[#allocation8 + $0x18] sm:$0xf] }
  0xd5   : > { %v620_v12 = vmul.f32 %v3858_v11, %v3858_v11 }
  0xd7   : > { %622 = vadd.xlane.f32.xlu1 %v620_v12  ;;  %v2870_v12 = vld [vmem:[#allocation8 + $0x20] sm:$0xf0]  ;;  %865 = vmatpush.bf16.msra.mxu2 %v2487_v20  ;;  %v873_v20 = vlaneseq }
  0xd8   : > { %v608_v13 = vpop.xlane.xlu0 %607 }
  0xd9   : > { %v617_v14 = vmul.f32 %v3854_v8, %v608_v13  ;;  %v2869_v13 = vld [vmem:[#allocation8 + $0x1c] sm:$0xf]  ;;  %v3880_v21 = vshrl.u32 %v873_v20, 7  ;;  %v3882_v22 = vand.u32 127, %v873_v20 }
  0xdb   : > { %v3864_v15 = vsub.f32 %v3851_v1, %v617_v14  ;;  %v2479_v14 = vor.u32 %v2870_v12, %v2478_v10  ;;  %866 = vmatpush.bf16.msra.mxu2 %v2475_v31  ;;  %vm878_vm8 = vcmp.le.s32.totalorder %v3882_v22, %v3880_v21  ;;  %v3891_v26 = vadd.s32 8, %v3880_v21 }
  0xdd   : > { %v621_v16 = vmul.f32 %v3864_v15, %v3864_v15  ;;  %837 = vmatpush.bf16.msra.mxu0 %v2479_v14  ;;  %vm879_vm10 = vcmp.le.s32.totalorder %v3882_v22, %v3891_v26 }
  0xdf   : > { %624 = vadd.xlane.f32.xlu1 %v621_v16  ;;  %v2480_v16 = vld [vmem:[#allocation8 + $0x24] sm:$0xf0] }
  0xe0   : > { %v2483_v19 = vor.u32 %v2869_v13, %v2480_v16 }
  0xe1   : > { %838 = vmatpush.bf16.msra.mxu0 %v2467_v25 }
  0xe2   : > { %851 = vmatpush.bf16.msra.mxu1 %v2483_v19 }
  0xe6   : > { %852 = vmatpush.bf16.msra.mxu1 %v2471_v30 }
 0x14a   : > { %v623_v24 = vpop.xlane.xlu1 %622 }
 0x14b   : > { %v626_v29 = vmul.f32 %v623_v24, %v3854_v8 }
 0x14d   : > { %v628_v32 = vadd.f32 1e-05, %v626_v29 }
 0x14f   : > { %3122 = vrsqrt.f32 %v628_v32  ;;  %vm636_vm2 = vweird.f32 %v628_v32 }
 0x152   : > { %v625_v33 = vpop.xlane.xlu1 %624 }
 0x153   : > { %v627_v34 = vmul.f32 %v625_v33, %v3854_v8 }
 0x155   : > { %v3123_v35 = vpop.eup %3122  ;;  %v629_v36 = vadd.f32 1e-05, %v627_v34 }
 0x156   : > { %v631_v37 = vmul.f32 %v3123_v35, %v628_v32  ;;  %vm637_vm1 = vweird.f32 %v3123_v35 }
 0x157   : > { %3124 = vrsqrt.f32 %v629_v36  ;;  %vm638_vm3 = vmor %vm636_vm2, %vm637_vm1  ;;  %vm646_vm5 = vweird.f32 %v629_v36 }
 0x158   : > { %v632_v38 = vmul.f32 %v3123_v35, %v631_v37 }
 0x15a   : > { %v633_v39 = vmul.f32 0.5, %v632_v38 }
 0x15c   : > { %v634_v40 = vsub.f32 1.5, %v633_v39 }
 0x15d   : > { %v3125_v41 = vpop.eup %3124 }
 0x15e   : > { %v635_v42 = vmul.f32 %v3123_v35, %v634_v40  ;;  %v641_v43 = vmul.f32 %v3125_v41, %v629_v36  ;;  %vm647_vm4 = vweird.f32 %v3125_v41 }
 0x15f   : > { %vm648_vm6 = vmor %vm646_vm5, %vm647_vm4 }
 0x160   : > { %v642_v44 = vmul.f32 %v3125_v41, %v641_v43  ;;  %v639_v45 = vsel %vm638_vm3, %v3123_v35, %v635_v42  ;;  %v2891_v42 = vld [vmem:[#allocation10 + $0x8] sm:$0xff]  ;;  %v2890_v43 = vld [vmem:[#allocation10] sm:$0xff] }
 0x161   : > { %v650_v48 = vmul.f32 %v639_v45, %v3858_v11  ;;  %v695_v11 = vld [vmem:[%s4288_s4] sm:$0x7]  ;;  %1081 = vmatpush.bf16.msrb.mxu2 %v2891_v42 }
 0x162   : > { %v643_v46 = vmul.f32 0.5, %v642_v44  ;;  %v698_v61 = vperm.slane %v695_v11, 1  ;;  %v699_v7 = vperm.slane %v695_v11, 2 }
 0x163   : > { %v655_v53 = vmul.f32 %v3114_v49, %v650_v48 }
 0x164   : > { %v644_v47 = vsub.f32 1.5, %v643_v46 }
 0x165   : > { %v660_v56 = vadd.f32 %v3115_v54, %v655_v53  ;;  %1082 = vmatpush.bf16.msrb.mxu2 %v2890_v43 }
 0x166   : > { %v645_v50 = vmul.f32 %v3125_v41, %v644_v47 }
 0x168   : > { %v649_v51 = vsel %vm648_vm6, %v3125_v41, %v645_v50 }
 0x169   : > { %v651_v52 = vmul.f32 %v649_v51, %v3864_v15  ;;  %v697_v15 = vperm.slane %v695_v11, 0 }
 0x16b   : > { %v656_v55 = vmul.f32 %v3114_v49, %v651_v52 }
 0x16d   : > { %v661_v57 = vadd.f32 %v3115_v54, %v656_v55 }
 0x16f   : > { %v662_v58 = vpack.c.bf16 %v661_v57, %v660_v56 }
 0x171   : > { %839 = vmatmul.bf16.vlgmr.msra.gmra.mxu0 %v662_v58  ;;  %853 = vmatmul.bf16.vlgmr.msra.gmra.mxu1 %v662_v58 }
 0x172   : > { %867 = vmatmul.bf16.vlgmr.msra.gmra.mxu2 %v662_v58 }
 0x1ee   : > { %v840_v59 = vpop.f32.mrf.mxu0  ;;  %v854_v60 = vpop.f32.mrf.mxu1 }
 0x1ef   : > { %v855_v3 = vadd.f32 %v854_v60, %v698_v61  ;;  %v841_v9 = vadd.f32 %v840_v59, %v697_v15 }
 0x1f1   : > { %v880_v17 = vmul.f32 0.17677669, %v841_v9 }
 0x1f5   : > { %v868_v62 = vpop.f32.mrf.mxu2 }
 0x1f6   : > { %v842_v63 = vpop.f32.mrf.mxu0  ;;  %v856_v2 = vpop.f32.mrf.mxu1  ;;  %v869_v14 = vadd.f32 %v868_v62, %v699_v7 }
 0x1f7   : > { %v857_v4 = vadd.f32 %v856_v2, %v698_v61  ;;  %v843_v5 = vadd.f32 %v842_v63, %v697_v15 }
 0x1f9   : > { %v883_v6 = vpack.c.bf16 %v857_v4, %v855_v3  ;;  %v881_v12 = vmul.f32 0.17677669, %v843_v5 }
 0x1fb   : > { %v890_v10 = vsel %vm885_vm7, %v883_v6, 0  ;;  %v882_v19 = vpack.c.bf16 %v881_v12, %v880_v17 }
 0x1fc   : > { %899 = vmatpush.bf16.xpose.msra.mxu3 %v890_v10 }
 0x1fd   : > { %v870_v13 = vpop.f32.mrf.mxu2 }
 0x1fe   : > { %v871_v16 = vadd.f32 %v870_v13, %v699_v7 }
 0x200   : > { %v3876_v18 = vpack.c.bf16 %v871_v16, %v869_v14 }
 0x203   : > { %2560 = vmatmul.msk.bf16.vlgmr.msra.gmra.mxu3 %vm885_vm7, %v882_v19 }
 0x204   : > { %942 = vmatpush.bf16.msrb.mxu3 %v3876_v18 }
 0x286   : > { %v901_v23 = vpop.f32.mrf.mxu3 }
 0x287   : > { %v906_v24 = vsel %vm878_vm8, %v901_v23, -inf }
 0x288   : > { %v909_v25 = vsel %vm908_vm9, %v906_v24, -inf }
 0x289   : > { %910 = vmax.xlane.f32.xlu2 %v909_v25 }
 0x28e   : > { %v903_v27 = vpop.f32.mrf.mxu3 }
 0x28f   : > { %v907_v28 = vsel %vm879_vm10, %v903_v27, -inf }
 0x290   : > { %v912_v29 = vsel %vm908_vm9, %v907_v28, -inf }
 0x291   : > { %913 = vmax.xlane.f32.xlu2 %v912_v29 }
 0x2a9   : > { %958 = vrot.lane.b32.xlu2 %v883_v6, %s3600_s22 }
 0x2b1   : > { %1091 = vrot.lane.b32.xlu2 %v883_v6, %s3601_s18 }
 0x2b9   : > { %1089 = vrot.lane.b32.xlu2 %v882_v19, %s3601_s18 }
 0x2fc   : > { %v911_v30 = vpop.xlane.xlu2 %910 }
 0x2fd   : > { %v915_v31 = vsub.f32 %v906_v24, %v911_v30 }
 0x2ff   : > { %v917_v32 = vmul.f32 1.442695, %v915_v31 }
 0x301   : > { %3126 = vpow2.f32 %v917_v32 }
 0x304   : > { %v914_v33 = vpop.xlane.xlu2 %913 }
 0x305   : > { %v916_v34 = vsub.f32 %v907_v28, %v914_v33 }
 0x307   : > { %v3127_v35 = vpop.eup %3126  ;;  %v919_v36 = vmul.f32 1.442695, %v916_v34 }
 0x308   : > { %v921_v37 = vsel %vm908_vm9, %v3127_v35, 0.0 }
 0x309   : > { %3128 = vpow2.f32 %v919_v36  ;;  %922 = vadd.xlane.f32.xlu0 %v921_v37 }
 0x30c   : > { %v959_v38 = vpop.permute.xlu2 %958 }
 0x30d   : > { %v964_v39 = vsel %vm885_vm7, %v959_v38, 0 }
 0x30e   : > { %973 = vmatpush.bf16.xpose.msra.mxu3 %v964_v39 }
 0x30f   : > { %v3129_v40 = vpop.eup %3128 }
 0x310   : > { %v924_v41 = vsel %vm908_vm9, %v3129_v40, 0.0 }
 0x311   : > { %925 = vadd.xlane.f32.xlu1 %v924_v41 }
 0x314   : > { %v1092_v50 = vpop.permute.xlu2 %1091 }
 0x315   : > { %v1097_v52 = vsel %vm885_vm7, %v1092_v50, 0 }
 0x31c   : > { %v1090_v56 = vpop.permute.xlu2 %1089 }
 0x31d   : > { %955 = vrot.lane.b32.xlu0 %v882_v19, %s3600_s22 }
 0x325   : > { %1194 = vrot.lane.b32.xlu0 %v882_v19, %s3602_s24 }
 0x32a   : > { %1196 = vrot.lane.b32.xlu1 %v883_v6, %s3602_s24 }
 0x37c   : > { %v923_v44 = vpop.xlane.xlu0 %922 }
 0x37d   : > { %3130 = vrcp.f32 %v923_v44 }
 0x383   : > { %v3131_v46 = vpop.eup %3130 }
 0x384   : > { %v926_v45 = vpop.xlane.xlu1 %925  ;;  %v929_v48 = vmul.f32 %v3131_v46, %v3127_v35 }
 0x385   : > { %3132 = vrcp.f32 %v926_v45 }
 0x38b   : > { %v3133_v47 = vpop.eup %3132 }
 0x38c   : > { %v930_v49 = vmul.f32 %v3133_v47, %v3129_v40 }
 0x38e   : > { %v931_v51 = vpack.c.bf16 %v930_v49, %v929_v48 }
 0x38f   : > { %v956_v55 = vpop.permute.xlu0 %955 }
 0x390   : > { %2561 = vmatmul.msk.bf16.vlgmr.msrb.gmra.mxu3 %vm908_vm9, %v931_v51 }
 0x391   : > { %1106 = vmatpush.bf16.xpose.msrb.mxu3 %v1097_v52 }
 0x397   : > { %v1195_v2 = vpop.permute.xlu0 %1194 }
 0x39c   : > { %v1197_v53 = vpop.permute.xlu1 %1196 }
 0x39d   : > { %v1202_v54 = vsel %vm885_vm7, %v1197_v53, 0 }
 0x39e   : > { %1211 = vmatpush.bf16.xpose.msra.mxu2 %v1202_v54 }
 0x3a0   : > { %2562 = vmatmul.msk.bf16.vlgmr.msra.gmra.mxu3 %vm885_vm7, %v956_v55 }
 0x3b0   : > { %2582 = vmatmul.msk.bf16.vlgmr.msrb.gmra.mxu3 %vm885_vm7, %v1090_v56 }
 0x413   : > { %v944_v57 = vpop.f32.mrf.mxu3 }
 0x41b   : > { %v946_v58 = vpop.f32.mrf.mxu3 }
 0x41c   : > { %v949_v59 = vpack.c.bf16 %v946_v58, %v944_v57 }
 0x41e   : > { %2581 = vmatmul.msk.bf16.vlgmr.msrb.gmra.mxu2 %vm885_vm7, %v949_v59  ;;  %v2893_v59 = vld [vmem:[#allocation10 + $0x18] sm:$0xff] }
 0x41f   : > { %1052 = vmatpush.bf16.msrb.mxu1 %v2893_v59 }
 0x423   : > { %v975_v60 = vpop.f32.mrf.mxu3 }
 0x424   : > { %v980_v11 = vsel %vm878_vm8, %v975_v60, -inf  ;;  %v2892_v60 = vld [vmem:[#allocation10 + $0x10] sm:$0xff] }
 0x425   : > { %v982_v61 = vsel %vm908_vm9, %v980_v11, -inf  ;;  %1053 = vmatpush.bf16.msrb.mxu1 %v2892_v60 }
 0x426   : > { %983 = vmax.xlane.f32.xlu1 %v982_v61 }
 0x42b   : > { %v977_v62 = vpop.f32.mrf.mxu3 }
 0x42c   : > { %v981_v63 = vsel %vm879_vm10, %v977_v62, -inf }
 0x42d   : > { %v985_v15 = vsel %vm908_vm9, %v981_v63, -inf }
 0x42e   : > { %2593 = vmatmul.msk.bf16.vlgmr.msra.gmra.mxu2 %vm885_vm7, %v1195_v2  ;;  %986 = vmax.xlane.f32.xlu0 %v985_v15 }
 0x433   : > { %v1108_v3 = vpop.f32.mrf.mxu3 }
 0x434   : > { %v1113_v4 = vsel %vm878_vm8, %v1108_v3, -inf }
 0x435   : > { %v1115_v5 = vsel %vm908_vm9, %v1113_v4, -inf }
 0x436   : > { %1116 = vmax.xlane.f32.xlu0 %v1115_v5 }
 0x43b   : > { %v1110_v24 = vpop.f32.mrf.mxu3 }
 0x43c   : > { %v1114_v28 = vsel %vm879_vm10, %v1110_v24, -inf  ;;  %v2896_v24 = vld [vmem:[#allocation10 + $0x30] sm:$0xff] }
 0x43d   : > { %v1118_v32 = vsel %vm908_vm9, %v1114_v28, -inf }
 0x499   : > { %v984_v16 = vpop.xlane.xlu1 %983 }
 0x49a   : > { %v988_v19 = vsub.f32 %v980_v11, %v984_v16 }
 0x49c   : > { %v990_v25 = vmul.f32 1.442695, %v988_v19 }
 0x4a1   : > { %v3927_v6 = vpop.f32.mrf.mxu2  ;;  %v987_v7 = vpop.xlane.xlu0 %986 }
 0x4a2   : > { %v989_v9 = vsub.f32 %v981_v63, %v987_v7 }
 0x4a4   : > { %v992_v10 = vmul.f32 1.442695, %v989_v9 }
 0x4a6   : > { %3134 = vpow2.f32 %v992_v10 }
 0x4a7   : > { %3136 = vpow2.f32 %v990_v25  ;;  %v2895_v25 = vld [vmem:[#allocation10 + $0x28] sm:$0xff] }
 0x4a8   : > { %1184 = vmatpush.bf16.msra.mxu1 %v2895_v25  ;;  %v2921_v25 = vld [vmem:[#allocation16 + $0xb4] sm:$0xf0] }
 0x4a9   : > { %v3929_v12 = vpop.f32.mrf.mxu2  ;;  %v1117_v27 = vpop.xlane.xlu0 %1116 }
 0x4aa   : > { %v1121_v30 = vsub.f32 %v1113_v4, %v1117_v27  ;;  %v2894_v27 = vld [vmem:[#allocation10 + $0x20] sm:$0xff] }
 0x4ac   : > { %v3135_v13 = vpop.eup %3134  ;;  %v1123_v33 = vmul.f32 1.442695, %v1121_v30  ;;  %1185 = vmatpush.bf16.msra.mxu1 %v2894_v27 }
 0x4ad   : > { %v997_v14 = vsel %vm908_vm9, %v3135_v13, 0.0  ;;  %v3137_v34 = vpop.eup %3136 }
 0x4ae   : > { %998 = vadd.xlane.f32.xlu0 %v997_v14  ;;  %3138 = vpow2.f32 %v1123_v33  ;;  %v994_v35 = vsel %vm908_vm9, %v3137_v34, 0.0 }
 0x4b1   : > { %v1213_v17 = vpop.f32.mrf.mxu2 }
 0x4b2   : > { %v1218_v20 = vsel %vm878_vm8, %v1213_v17, -inf }
 0x4b3   : > { %v1220_v23 = vsel %vm908_vm9, %v1218_v20, -inf }
 0x4b4   : > { %1221 = vmax.xlane.f32.xlu2 %v1220_v23  ;;  %v3945_v36 = vpop.eup %3138  ;;  %v2897_v23 = vld [vmem:[#allocation10 + $0x38] sm:$0xff] }
 0x4b5   : > { %v1127_v37 = vsel %vm908_vm9, %v3945_v36, 0.0 }
 0x4b9   : > { %v1215_v29 = vpop.f32.mrf.mxu2 }
 0x4ba   : > { %v1219_v31 = vsel %vm879_vm10, %v1215_v29, -inf }
 0x4bb   : > { %v1223_v21 = vsel %vm908_vm9, %v1219_v31, -inf }
 0x4bc   : > { %1224 = vmax.xlane.f32.xlu1 %v1223_v21  ;;  %1119 = vmax.xlane.f32.xlu2 %v1118_v32 }
 0x4c4   : > { %995 = vadd.xlane.f32.xlu1 %v994_v35 }
 0x4cc   : > { %1128 = vadd.xlane.f32.xlu1 %v1127_v37 }
 0x4d4   : > { %1006 = vrot.lane.b32.xlu2 %v3876_v18, %s3600_s22  ;;  %s2274_s22 = scalar_lea.hbm %s4321_s16, %s2962_s14 }
 0x521   : > { %v999_v44 = vpop.xlane.xlu0 %998 }
 0x527   : > { %v1222_v22 = vpop.xlane.xlu2 %1221 }
 0x528   : > { %v1226_v26 = vsub.f32 %v1218_v20, %v1222_v22 }
 0x52a   : > { %v1228_v38 = vmul.f32 1.442695, %v1226_v26 }
 0x52c   : > { %3140 = vpow2.f32 %v1228_v38  ;;  %v3116_v38 = vld [vmem:[#allocation11] ss:$0 sm:$0xff] }
 0x52f   : > { %v1225_v39 = vpop.xlane.xlu1 %1224  ;;  %v1120_v40 = vpop.xlane.xlu2 %1119 }
 0x530   : > { %v1122_v41 = vsub.f32 %v1114_v28, %v1120_v40  ;;  %v1227_v45 = vsub.f32 %v1219_v31, %v1225_v39 }
 0x532   : > { %v3141_v42 = vpop.eup %3140  ;;  %v1125_v43 = vmul.f32 1.442695, %v1122_v41  ;;  %v1230_v47 = vmul.f32 1.442695, %v1227_v45 }
 0x533   : > { %v1232_v46 = vsel %vm908_vm9, %v3141_v42, 0.0 }
 0x534   : > { %1233 = vadd.xlane.f32.xlu1 %v1232_v46  ;;  %3142 = vpow2.f32 %v1125_v43 }
 0x535   : > { %3144 = vrcp.f32 %v999_v44 }
 0x537   : > { %v996_v48 = vpop.xlane.xlu1 %995  ;;  %v1007_v49 = vpop.permute.xlu2 %1006 }
 0x538   : > { %3146 = vrcp.f32 %v996_v48  ;;  %1019 = vmatpush.bf16.msrb.mxu0 %v1007_v49 }
 0x539   : > { %3148 = vpow2.f32 %v1230_v47 }
 0x53a   : > { %v3143_v50 = vpop.eup %3142 }
 0x53b   : > { %v3145_v51 = vpop.eup %3144  ;;  %v1130_v52 = vsel %vm908_vm9, %v3143_v50, 0.0 }
 0x53c   : > { %1131 = vadd.xlane.f32.xlu0 %v1130_v52  ;;  %v1003_v54 = vmul.f32 %v3145_v51, %v3135_v13  ;;  %v2718_v52 = vld [vmem:[#allocation16 + $0xe0] sm:$0xf] }
 0x53e   : > { %v3147_v53 = vpop.eup %3146 }
 0x53f   : > { %v1002_v55 = vmul.f32 %v3147_v53, %v3137_v34  ;;  %v3149_v56 = vpop.eup %3148  ;;  %v1129_v11 = vpop.xlane.xlu1 %1128  ;;  %v2928_v53 = vld [vmem:[#allocation16 + $0xec] sm:$0xf0] }
 0x540   : > { %v1235_v58 = vsel %vm908_vm9, %v3149_v56, 0.0 }
 0x541   : > { %v1004_v57 = vpack.c.bf16 %v1003_v54, %v1002_v55  ;;  %v2926_v54 = vld [vmem:[#allocation16 + $0xe4] sm:$0xf]  ;;  %v2719_v55 = vor.u32 %v2928_v53, %v2718_v52  ;;  %v2638_v53 = vld [vmem:[#allocation16 + $0x40] sm:$0xf] }
 0x543   : > { %2563 = vmatmul.msk.bf16.vlgmr.msrb.gmra.mxu0 %vm908_vm9, %v1004_v57  ;;  %v2726_v57 = vld [vmem:[#allocation16 + $0xe8] sm:$0xf] }
 0x544   : > { %1236 = vadd.xlane.f32.xlu0 %v1235_v58  ;;  %v2929_v58 = vld [vmem:[#allocation16 + $0xf4] sm:$0xf0] }
 0x545   : > { %v2727_v60 = vor.u32 %v2929_v58, %v2726_v57  ;;  %v2640_v57 = vld [vmem:[#allocation16 + $0x50] sm:$0xf0]  ;;  %v2646_v58 = vld [vmem:[#allocation16 + $0x48] sm:$0xf] }
 0x54d   : > { %1243 = vrot.lane.b32.xlu1 %v3876_v18, %s3602_s24  ;;  %s2277_s24 = sshll.u32 %s2274_s22, 4  ;;  %s2278_s24 = int_to_ptr.hbm [resolvable:$true] %s2277_s24 }
 0x54e   : > { %s3508_s21 = sshra.s32 %s2278_s24, 4  ;;  %s3509_s21 = int_to_ptr.hbm [resolvable:$true] %s3508_s21 }
 0x54f   : > { %s3510_s5 = scalar_lea.hbm %s3509_s21, 16  ;;  %p3515_p13 = scmp.lt.s32.totalorder %s3509_s21, %s4321_s16 }
 0x550   : > { %p3511_p1 = scmp.ne.s32.totalorder %s3509_s21, %s3510_s5  ;;  %p3516_p7 = scmp.lt.s32.totalorder %s3514_s23, %s3510_s5 }
 0x552   : > { %p3512_p3 = pnand %p3511_p1, %p3785_p0  ;;  %p3517_p8 = por %p3516_p7, %p3515_p13 }
 0x554   : > { %p3513_p4 = pneg %p3512_p3 }
 0x556   : > { %p3518_p9 = pnand %p3517_p8, %p3513_p4 }
 0x558   : > { %1138 = vrot.lane.b32.xlu0 %v3876_v18, %s3601_s18  ;;  %s2275_s18 = sshll.u32 %s599_s6, 4  ;;  %s2276_s18 = int_to_ptr.vmem [resolvable:$true] %s2275_s18 }
 0x5a7   : > { %v1234_v62 = vpop.xlane.xlu1 %1233 }
 0x5a8   : > { %3150 = vrcp.f32 %v1234_v62 }
 0x5ae   : > { %v3151_v2 = vpop.eup %3150 }
 0x5af   : > { %v1132_v61 = vpop.xlane.xlu0 %1131  ;;  %v1240_v4 = vmul.f32 %v3151_v2, %v3141_v42  ;;  %v2924_v2 = vld [vmem:[#allocation16 + $0xcc] sm:$0xf0] }
 0x5b7   : > { %v1237_v63 = vpop.xlane.xlu0 %1236 }
 0x5b8   : > { %3152 = vrcp.f32 %v1237_v63  ;;  %v2702_v63 = vld [vmem:[#allocation16 + $0xc0] sm:$0xf] }
 0x5b9   : > { %3154 = vrcp.f32 %v1132_v61  ;;  %v2728_v61 = vld [vmem:[#allocation16 + $0xf8] sm:$0xf0] }
 0x5ba   : > { %3156 = vrcp.f32 %v1129_v11  ;;  %v2927_v11 = vld [vmem:[#allocation16 + $0xec] sm:$0xf] }
 0x5bb   : > { %v2731_v62 = vor.u32 %v2927_v11, %v2728_v61  ;;  %v2907_v61 = vld [vmem:[#allocation16 + $0x4c] sm:$0xf] }
 0x5be   : > { %v3153_v15 = vpop.eup %3152 }
 0x5bf   : > { %v1244_v3 = vpop.permute.xlu1 %1243  ;;  %v1241_v5 = vmul.f32 %v3153_v15, %v3149_v56  ;;  %v3155_v9 = vpop.eup %3154  ;;  %v2720_v56 = vld [vmem:[#allocation16 + $0xf0] sm:$0xf0]  ;;  %v2922_v15 = vld [vmem:[#allocation16 + $0xc4] sm:$0xf] }
 0x5c0   : > { %v1021_v7 = vpop.f32.mrf.mxu0  ;;  %1256 = vmatpush.bf16.msra.mxu3 %v1244_v3  ;;  %v3157_v10 = vpop.eup %3156  ;;  %v1136_v14 = vmul.f32 %v3155_v9, %v3143_v50  ;;  %v2723_v59 = vor.u32 %v2926_v54, %v2720_v56  ;;  %v2703_v3 = vor.u32 %v2924_v2, %v2702_v63  ;;  %v2908_v54 = vld [vmem:[#allocation16 + $0x4c] sm:$0xf0]  ;;  %v2622_v2 = vld [vmem:[#allocation16 + $0x20] sm:$0xf] }
 0x5c1   : > { %v1242_v18 = vpack.c.bf16 %v1241_v5, %v1240_v4  ;;  %v1135_v17 = vmul.f32 %v3157_v10, %v3945_v36  ;;  %v2704_v4 = vld [vmem:[#allocation16 + $0xd0] sm:$0xf0]  ;;  %v2710_v5 = vld [vmem:[#allocation16 + $0xc8] sm:$0xf]  ;;  %v2923_v10 = vld [vmem:[#allocation16 + $0xcc] sm:$0xf]  ;;  %v2639_v56 = vor.u32 %v2908_v54, %v2638_v53 }
 0x5c2   : > { %1576 = vmatpush.bf16.msrb.mxu2 %v2723_v59  ;;  %v2909_v59 = vld [vmem:[#allocation16 + $0x54] sm:$0xf0]  ;;  %v3118_v53 = vld [vmem:[#allocation14] ss:$0 sm:$0xff] }
 0x5c3   : > { %2594 = vmatmul.msk.bf16.vlgmr.msra.gmra.mxu3 %vm908_vm9, %v1242_v18  ;;  %v1137_v20 = vpack.c.bf16 %v1136_v14, %v1135_v17  ;;  %v2707_v18 = vor.u32 %v2922_v15, %v2704_v4  ;;  %v2920_v17 = vld [vmem:[#allocation16 + $0xac] sm:$0xf0]  ;;  %v2647_v11 = vor.u32 %v2909_v59, %v2646_v58 }
 0x5c4   : > { %1590 = vmatpush.bf16.msrb.mxu3 %v2727_v60  ;;  %v2904_v15 = vld [vmem:[#allocation16 + $0x2c] sm:$0xf0] }
 0x5c5   : > { %v2623_v4 = vor.u32 %v2904_v15, %v2622_v2 }
 0x5c6   : > { %1577 = vmatpush.bf16.msrb.mxu2 %v2707_v18  ;;  %v2905_v18 = vld [vmem:[#allocation16 + $0x34] sm:$0xf0] }
 0x5c8   : > { %v1023_v13 = vpop.f32.mrf.mxu0 }
 0x5c9   : > { %v1026_v16 = vpack.c.bf16 %v1023_v13, %v1021_v7  ;;  %v2925_v7 = vld [vmem:[#allocation16 + $0xd4] sm:$0xf0]  ;;  %v2712_v13 = vld [vmem:[#allocation16 + $0xd8] sm:$0xf0] }
 0x5ca   : > { %v1139_v19 = vpop.permute.xlu0 %1138  ;;  %v2711_v9 = vor.u32 %v2925_v7, %v2710_v5  ;;  %v2715_v14 = vor.u32 %v2923_v10, %v2712_v13  ;;  %v2624_v5 = vld [vmem:[#allocation16 + $0x30] sm:$0xf0]  ;;  %v2630_v7 = vld [vmem:[#allocation16 + $0x28] sm:$0xf]  ;;  %v2903_v13 = vld [vmem:[#allocation16 + $0x2c] sm:$0xf] }
 0x5cb   : > { %2572 = vmatmul.msk.bf16.vlgmr.msrb.gmra.mxu1 %vm885_vm7, %v1026_v16  ;;  %1151 = vmatpush.bf16.msra.mxu0 %v1139_v19  ;;  %v2686_v16 = vld [vmem:[#allocation16 + $0xa0] sm:$0xf]  ;;  %v2918_v19 = vld [vmem:[#allocation16 + $0xa4] sm:$0xf]  ;;  %v2631_v10 = vor.u32 %v2905_v18, %v2630_v7 }
 0x5cc   : > { %1562 = vmatpush.bf16.msrb.mxu1 %v2719_v55  ;;  %1591 = vmatpush.bf16.msrb.mxu3 %v2711_v9  ;;  %v2906_v55 = vld [vmem:[#allocation16 + $0x44] sm:$0xf] }
 0x5cd   : > { %v2643_v60 = vor.u32 %v2906_v55, %v2640_v57 }
 0x5ce   : > { %2583 = vmatmul.msk.bf16.vlgmr.msra.gmra.mxu0 %vm908_vm9, %v1137_v20  ;;  %v2687_v20 = vor.u32 %v2920_v17, %v2686_v16  ;;  %v2606_v16 = vld [vmem:[#allocation16] sm:$0xf] }
 0x5cf   : > { %1289 = vmatpush.bf16.msrb.mxu0 %v2897_v23  ;;  %v2688_v23 = vld [vmem:[#allocation16 + $0xb0] sm:$0xf0] }
 0x5d0   : > { %1563 = vmatpush.bf16.msrb.mxu1 %v2703_v3  ;;  %v2691_v27 = vor.u32 %v2918_v19, %v2688_v23  ;;  %v2902_v3 = vld [vmem:[#allocation16 + $0x24] sm:$0xf] }
 0x5d1   : > { %v2627_v9 = vor.u32 %v2902_v3, %v2624_v5  ;;  %v2898_v23 = vld [vmem:[#allocation16 + $0x4] sm:$0xf] }
 0x5d2   : > { %1578 = vmatpush.bf16.msrb.mxu2 %v2691_v27 }
 0x5d3   : > { %1290 = vmatpush.bf16.msrb.mxu0 %v2896_v24  ;;  %v2694_v24 = vld [vmem:[#allocation16 + $0xa8] sm:$0xf] }
 0x5d4   : > { %1564 = vmatpush.bf16.msrb.mxu1 %v2687_v20  ;;  %v2900_v20 = vld [vmem:[#allocation16 + $0xc] sm:$0xf0] }
 0x5d5   : > { %v2607_v27 = vor.u32 %v2900_v20, %v2606_v16 }
 0x5d7   : > { %1604 = vmatpush.bf16.msra.mxu0 %v2731_v62  ;;  %v2648_v62 = vld [vmem:[#allocation16 + $0x58] sm:$0xf0] }
 0x5d8   : > { %v2651_v63 = vor.u32 %v2907_v61, %v2648_v62 }
 0x5db   : > { %1605 = vmatpush.bf16.msra.mxu0 %v2715_v14  ;;  %v2632_v14 = vld [vmem:[#allocation16 + $0x38] sm:$0xf0] }
 0x5dc   : > { %v2635_v19 = vor.u32 %v2903_v13, %v2632_v14 }
 0x646   : > { %v1258_v28 = vpop.f32.mrf.mxu3 }
 0x648   : > { %v1055_v33 = vpop.f32.mrf.mxu1 }
 0x649   : > { %v1085_v35 = vadd.f32 %v3927_v6, %v1055_v33  ;;  %v2914_v33 = vld [vmem:[#allocation16 + $0x84] sm:$0xf] }
 0x64b   : > { %v1153_v29 = vpop.f32.mrf.mxu0 }
 0x64e   : > { %v1260_v30 = vpop.f32.mrf.mxu3 }
 0x64f   : > { %v1263_v31 = vpack.c.bf16 %v1260_v30, %v1258_v28  ;;  %v2695_v28 = vor.u32 %v2921_v25, %v2694_v24  ;;  %v2696_v30 = vld [vmem:[#allocation16 + $0xb8] sm:$0xf0]  ;;  %v2608_v24 = vld [vmem:[#allocation16 + $0x10] sm:$0xf0] }
 0x650   : > { %v1057_v34 = vpop.f32.mrf.mxu1 }
 0x651   : > { %2603 = vmatmul.msk.bf16.vlgmr.msrb.gmra.mxu0 %vm885_vm7, %v1263_v31  ;;  %v1087_v40 = vadd.f32 %v3929_v12, %v1057_v34  ;;  %1592 = vmatpush.bf16.msrb.mxu3 %v2695_v28  ;;  %v2611_v28 = vor.u32 %v2898_v23, %v2608_v24 }
 0x653   : > { %v1155_v21 = vpop.f32.mrf.mxu0 }
 0x654   : > { %v1158_v32 = vpack.c.bf16 %v1155_v21, %v1153_v29  ;;  %v2919_v29 = vld [vmem:[#allocation16 + $0xac] sm:$0xf]  ;;  %v2670_v21 = vld [vmem:[#allocation16 + $0x80] sm:$0xf] }
 0x655   : > { %v2699_v31 = vor.u32 %v2919_v29, %v2696_v30  ;;  %v2614_v29 = vld [vmem:[#allocation16 + $0x8] sm:$0xf]  ;;  %v2901_v30 = vld [vmem:[#allocation16 + $0x14] sm:$0xf0] }
 0x656   : > { %2592 = vmatmul.msk.bf16.vlgmr.msra.gmra.mxu1 %vm885_vm7, %v1158_v32  ;;  %v2916_v32 = vld [vmem:[#allocation16 + $0x8c] sm:$0xf0] }
 0x657   : > { %1606 = vmatpush.bf16.msra.mxu0 %v2699_v31  ;;  %v2671_v34 = vor.u32 %v2916_v32, %v2670_v21  ;;  %v2899_v31 = vld [vmem:[#allocation16 + $0xc] sm:$0xf]  ;;  %v2615_v21 = vor.u32 %v2901_v30, %v2614_v29  ;;  %v2616_v32 = vld [vmem:[#allocation16 + $0x18] sm:$0xf0] }
 0x659   : > { %1565 = vmatpush.bf16.msrb.mxu1 %v2671_v34  ;;  %v2619_v34 = vor.u32 %v2899_v31, %v2616_v32 }
 0x6ce   : > { %v1292_v36 = vpop.f32.mrf.mxu0 }
 0x6d3   : > { %v1187_v37 = vpop.f32.mrf.mxu1 }
 0x6d4   : > { %v1192_v22 = vadd.f32 %v1187_v37, %v1085_v35  ;;  %v2672_v35 = vld [vmem:[#allocation16 + $0x90] sm:$0xf0]  ;;  %v2917_v37 = vld [vmem:[#allocation16 + $0x94] sm:$0xf0] }
 0x6d6   : > { %v1297_v26 = vadd.f32 %v1292_v36, %v1192_v22  ;;  %v1294_v44 = vpop.f32.mrf.mxu0  ;;  %v2678_v36 = vld [vmem:[#allocation16 + $0x88] sm:$0xf]  ;;  %v2675_v22 = vor.u32 %v2914_v33, %v2672_v35 }
 0x6d8   : > { %v1299_v39 = vadd.f32 %v1297_v26, %v3848_v0  ;;  %v2679_v26 = vor.u32 %v2917_v37, %v2678_v36  ;;  %1579 = vmatpush.bf16.msrb.mxu2 %v2675_v22 }
 0x6da   : > { %v3968_v41 = vadd.f32 %v3116_v38, %v1299_v39  ;;  %v2680_v39 = vld [vmem:[#allocation16 + $0x98] sm:$0xf0]  ;;  %1593 = vmatpush.bf16.msrb.mxu3 %v2679_v26 }
 0x6db   : > { %v1189_v42 = vpop.f32.mrf.mxu1 }
 0x6dc   : > { %v1193_v43 = vadd.f32 %v1189_v42, %v1087_v40  ;;  %1309 = vadd.xlane.f32.xlu2 %v3968_v41  ;;  %v2654_v42 = vld [vmem:[#allocation16 + $0x60] sm:$0xf] }
 0x6de   : > { %v1298_v45 = vadd.f32 %v1294_v44, %v1193_v43  ;;  %v2912_v43 = vld [vmem:[#allocation16 + $0x6c] sm:$0xf0]  ;;  %v2910_v44 = vld [vmem:[#allocation16 + $0x64] sm:$0xf] }
 0x6e0   : > { %v1300_v46 = vadd.f32 %v1298_v45, %v3851_v1  ;;  %v2655_v45 = vor.u32 %v2912_v43, %v2654_v42 }
 0x6e2   : > { %v3972_v6 = vadd.f32 %v3116_v38, %v1300_v46  ;;  %v2915_v38 = vld [vmem:[#allocation16 + $0x8c] sm:$0xf]  ;;  %v2656_v46 = vld [vmem:[#allocation16 + $0x70] sm:$0xf0]  ;;  %1566 = vmatpush.bf16.msrb.mxu1 %v2655_v45 }
 0x6e3   : > { %v2683_v40 = vor.u32 %v2915_v38, %v2680_v39 }
 0x6e4   : > { %1311 = vadd.xlane.f32.xlu0 %v3972_v6 }
 0x6e5   : > { %1607 = vmatpush.bf16.msra.mxu0 %v2683_v40 }
 0x6e6   : > { %1567 = vmatpush.bf16.msrb.mxu1 %v2639_v56 }
 0x6ea   : > { %1568 = vmatpush.bf16.msrb.mxu1 %v2623_v4 }
 0x6ee   : > { %1569 = vmatpush.bf16.msrb.mxu1 %v2607_v27 }
 0x74f   : > { %v1310_v47 = vpop.xlane.xlu2 %1309 }
 0x750   : > { %v1313_v48 = vmul.f32 %v1310_v47, %v3854_v8  ;;  %v2662_v47 = vld [vmem:[#allocation16 + $0x68] sm:$0xf] }
 0x752   : > { %v3977_v0 = vsub.f32 %v3968_v41, %v1313_v48  ;;  %v2913_v48 = vld [vmem:[#allocation16 + $0x74] sm:$0xf0] }
 0x754   : > { %v1317_v12 = vmul.f32 %v3977_v0, %v3977_v0 }
 0x756   : > { %1319 = vadd.xlane.f32.xlu1 %v1317_v12  ;;  %v2659_v12 = vor.u32 %v2910_v44, %v2656_v46 }
 0x757   : > { %v1312_v49 = vpop.xlane.xlu0 %1311 }
 0x758   : > { %v1314_v50 = vmul.f32 %v1312_v49, %v3854_v8  ;;  %v2663_v49 = vor.u32 %v2913_v48, %v2662_v47  ;;  %1580 = vmatpush.bf16.msrb.mxu2 %v2659_v12  ;;  %v3117_v12 = vld [vmem:[#allocation13] ss:$0 sm:$0xff] }
 0x75a   : > { %v3983_v51 = vsub.f32 %v3972_v6, %v1314_v50  ;;  %v2911_v50 = vld [vmem:[#allocation16 + $0x6c] sm:$0xf]  ;;  %1594 = vmatpush.bf16.msrb.mxu3 %v2663_v49 }
 0x75c   : > { %v1318_v1 = vmul.f32 %v3983_v51, %v3983_v51  ;;  %1581 = vmatpush.bf16.msrb.mxu2 %v2643_v60 }
 0x75e   : > { %1321 = vadd.xlane.f32.xlu2 %v1318_v1  ;;  %v2664_v1 = vld [vmem:[#allocation16 + $0x78] sm:$0xf0]  ;;  %1595 = vmatpush.bf16.msrb.mxu3 %v2647_v11 }
 0x75f   : > { %v2667_v52 = vor.u32 %v2911_v50, %v2664_v1 }
 0x760   : > { %1582 = vmatpush.bf16.msrb.mxu2 %v2627_v9 }
 0x761   : > { %1608 = vmatpush.bf16.msra.mxu0 %v2667_v52 }
 0x762   : > { %1596 = vmatpush.bf16.msrb.mxu3 %v2631_v10 }
 0x764   : > { %1583 = vmatpush.bf16.msrb.mxu2 %v2611_v28 }
 0x765   : > { %1609 = vmatpush.bf16.msra.mxu0 %v2651_v63 }
 0x766   : > { %1597 = vmatpush.bf16.msrb.mxu3 %v2615_v21 }
 0x769   : > { %1610 = vmatpush.bf16.msra.mxu0 %v2635_v19 }
 0x76d   : > { %1611 = vmatpush.bf16.msra.mxu0 %v2619_v34 }
 0x7c9   : > { %v1320_v17 = vpop.xlane.xlu1 %1319 }
 0x7ca   : > { %v1323_v25 = vmul.f32 %v1320_v17, %v3854_v8 }
 0x7cc   : > { %v1325_v33 = vadd.f32 1e-05, %v1323_v25 }
 0x7ce   : > { %3158 = vrsqrt.f32 %v1325_v33  ;;  %vm1333_vm12 = vweird.f32 %v1325_v33 }
 0x7d1   : > { %v1322_v35 = vpop.xlane.xlu2 %1321 }
 0x7d2   : > { %v1324_v36 = vmul.f32 %v1322_v35, %v3854_v8 }
 0x7d4   : > { %v3159_v37 = vpop.eup %3158  ;;  %v1326_v22 = vadd.f32 1e-05, %v1324_v36 }
 0x7d5   : > { %v1328_v26 = vmul.f32 %v3159_v37, %v1325_v33  ;;  %vm1334_vm11 = vweird.f32 %v3159_v37 }
 0x7d6   : > { %3160 = vrsqrt.f32 %v1326_v22  ;;  %vm1335_vm13 = vmor %vm1333_vm12, %vm1334_vm11  ;;  %vm1343_vm15 = vweird.f32 %v1326_v22 }
 0x7d7   : > { %v1329_v38 = vmul.f32 %v3159_v37, %v1328_v26 }
 0x7d9   : > { %v1330_v39 = vmul.f32 0.5, %v1329_v38 }
 0x7db   : > { %v1331_v40 = vsub.f32 1.5, %v1330_v39 }
 0x7dc   : > { %v3161_v42 = vpop.eup %3160 }
 0x7dd   : > { %v1332_v43 = vmul.f32 %v3159_v37, %v1331_v40  ;;  %v1338_v44 = vmul.f32 %v3161_v42, %v1326_v22  ;;  %vm1344_vm14 = vweird.f32 %v3161_v42 }
 0x7de   : > { %vm1345_vm0 = vmor %vm1343_vm15, %vm1344_vm14 }
 0x7df   : > { %v1339_v45 = vmul.f32 %v3161_v42, %v1338_v44  ;;  %v1336_v46 = vsel %vm1335_vm13, %v3159_v37, %v1332_v43 }
 0x7e0   : > { %v1347_v8 = vmul.f32 %v1336_v46, %v3977_v0  ;;  %v3994_v0 = vld [vmem:[%s4319_s20] sm:$0xf] }
 0x7e1   : > { %v1340_v47 = vmul.f32 0.5, %v1339_v45  ;;  %v1394_v58 = vperm.slane %v3994_v0, 0  ;;  %v1397_v59 = vperm.slane %v3994_v0, 3  ;;  %v1395_v63 = vperm.slane %v3994_v0, 1 }
 0x7e2   : > { %v1352_v52 = vmul.f32 %v3117_v12, %v1347_v8  ;;  %v1396_v15 = vperm.slane %v3994_v0, 2 }
 0x7e3   : > { %v1341_v48 = vsub.f32 1.5, %v1340_v47 }
 0x7e4   : > { %v1357_v55 = vadd.f32 %v3118_v53, %v1352_v52 }
 0x7e5   : > { %v1342_v49 = vmul.f32 %v3161_v42, %v1341_v48 }
 0x7e7   : > { %v1346_v50 = vsel %vm1345_vm0, %v3161_v42, %v1342_v49 }
 0x7e8   : > { %v1348_v1 = vmul.f32 %v1346_v50, %v3983_v51 }
 0x7ea   : > { %v1353_v54 = vmul.f32 %v3117_v12, %v1348_v1 }
 0x7ec   : > { %v1358_v56 = vadd.f32 %v3118_v53, %v1353_v54 }
 0x7ee   : > { %v1359_v57 = vpack.c.bf16 %v1358_v56, %v1357_v55 }
 0x7f0   : > { %1570 = vmatmul.bf16.vlgmr.msrb.gmra.mxu1 %v1359_v57  ;;  %1584 = vmatmul.bf16.vlgmr.msrb.gmra.mxu2 %v1359_v57 }
 0x7f1   : > { %1598 = vmatmul.bf16.vlgmr.msrb.gmra.mxu3 %v1359_v57  ;;  %1612 = vmatmul.bf16.vlgmr.msra.gmra.mxu0 %v1359_v57 }
 0x86d   : > { %v1571_v51 = vpop.f32.mrf.mxu1 }
 0x86e   : > { %v3998_v60 = vadd.f32 %v1571_v51, %v1394_v58  ;;  %v1613_v11 = vpop.f32.mrf.mxu0 }
 0x86f   : > { %v4000_v61 = vadd.f32 %v1613_v11, %v1397_v59 }
 0x870   : > { %v4003_v62 = vmul.f32 0.70710677, %v3998_v60 }
 0x871   : > { %v4007_v2 = vmul.f32 0.70710677, %v4000_v61 }
 0x872   : > { %v4011_v3 = vand.u32 2147483647, %v4003_v62 }
 0x873   : > { %v4014_v4 = vand.u32 2147483647, %v4007_v2  ;;  %v1585_v5 = vpop.f32.mrf.mxu2 }
 0x874   : > { %v1642_v7 = vmul.f32 0.3275911, %v4011_v3  ;;  %v4019_v18 = vadd.f32 %v1585_v5, %v1395_v63  ;;  %v1599_v9 = vpop.f32.mrf.mxu3 }
 0x875   : > { %v1645_v10 = vmul.f32 0.3275911, %v4014_v4  ;;  %v4024_v13 = vadd.f32 %v1599_v9, %v1396_v15  ;;  %v1573_v31 = vpop.f32.mrf.mxu1 }
 0x876   : > { %v1650_v14 = vadd.f32 1.0, %v1642_v7  ;;  %v4027_v17 = vmul.f32 0.70710677, %v4019_v18  ;;  %v1615_v33 = vpop.f32.mrf.mxu0  ;;  %v4046_v22 = vadd.f32 %v1573_v31, %v1394_v58 }
 0x877   : > { %v1653_v16 = vadd.f32 1.0, %v1645_v10  ;;  %v4030_v19 = vmul.f32 0.70710677, %v4024_v13  ;;  %v4048_v39 = vadd.f32 %v1615_v33, %v1397_v59 }
 0x878   : > { %3162 = vrcp.f32 %v1650_v14  ;;  %v4033_v20 = vand.u32 2147483647, %v4027_v17  ;;  %v1667_v35 = vand.u32 2147483647, %v1650_v14  ;;  %v1669_v36 = vand.u32 2147483648, %v1650_v14 }
 0x879   : > { %3164 = vrcp.f32 %v1653_v16  ;;  %v4036_v23 = vand.u32 2147483647, %v4030_v19  ;;  %v1714_v38 = vand.u32 2147483648, %v1653_v16  ;;  %v1712_v42 = vand.u32 2147483647, %v1653_v16 }
 0x87a   : > { %v1643_v24 = vmul.f32 0.3275911, %v4033_v20  ;;  %vm1663_vm3 = vweird.f32 %v1650_v14  ;;  %v1670_v44 = vor.u32 1.1754944e-38, %v1669_v36  ;;  %vm1708_vm5 = vweird.f32 %v1653_v16 }
 0x87b   : > { %v1644_v27 = vmul.f32 0.3275911, %v4036_v23  ;;  %v4051_v46 = vmul.f32 0.70710677, %v4046_v22  ;;  %vm1668_vm6 = vcmp.eq.f32.partialorder %v1667_v35, 8.507059e+37  ;;  %v1715_v8 = vor.u32 1.1754944e-38, %v1714_v38 }
 0x87c   : > { %v4040_v30 = vadd.f32 1.0, %v1643_v24  ;;  %v4054_v12 = vmul.f32 0.70710677, %v4048_v39  ;;  %vm1713_vm8 = vcmp.eq.f32.partialorder %v1712_v42, 8.507059e+37 }
 0x87d   : > { %v4042_v32 = vadd.f32 1.0, %v1644_v27  ;;  %v4068_v58 = vand.u32 2147483647, %v4051_v46 }
 0x87e   : > { %v3163_v25 = vpop.eup %3162  ;;  %3166 = vrcp.f32 %v4040_v30  ;;  %v4071_v11 = vand.u32 2147483647, %v4054_v12  ;;  %v1684_v27 = vand.u32 2147483648, %v4040_v30  ;;  %vm1678_vm10 = vweird.f32 %v4040_v30 }
 0x87f   : > { %v3165_v28 = vpop.eup %3164  ;;  %v1659_v29 = vmul.f32 %v3163_v25, %v1650_v14  ;;  %3168 = vrcp.f32 %v4042_v32  ;;  %vm1664_vm1 = vweird.f32 %v3163_v25  ;;  %v1646_v9 = vmul.f32 0.3275911, %v4068_v58 }
 0x880   : > { %v1704_v21 = vmul.f32 %v3165_v28, %v1653_v16  ;;  %vm1709_vm2 = vweird.f32 %v3165_v28  ;;  %vm1665_vm4 = vmor %vm1663_vm3, %vm1664_vm1  ;;  %v1850_v14 = vsub.f32 0.0, %v4011_v3  ;;  %v1649_v16 = vmul.f32 0.3275911, %v4071_v11 }
 0x881   : > { %v1660_v34 = vsub.f32 1.0, %v1659_v29  ;;  %vm1710_vm7 = vmor %vm1708_vm5, %vm1709_vm2  ;;  %vm1693_vm14 = vweird.f32 %v4042_v32 }
 0x882   : > { %v1705_v37 = vsub.f32 1.0, %v1704_v21  ;;  %v4084_v21 = vadd.f32 1.0, %v1649_v16  ;;  %v1858_v35 = vmul.f32 %v1850_v14, %v4011_v3  ;;  %v1697_v3 = vand.u32 2147483647, %v4042_v32 }
 0x883   : > { %v1661_v26 = vmul.f32 %v3163_v25, %v1660_v34  ;;  %v1853_v34 = vsub.f32 0.0, %v4014_v4 }
 0x884   : > { %v1706_v40 = vmul.f32 %v3165_v28, %v1705_v37  ;;  %v3167_v47 = vpop.eup %3166  ;;  %v1685_v37 = vor.u32 1.1754944e-38, %v1684_v27  ;;  %vm1698_vm0 = vcmp.eq.f32.partialorder %v1697_v3, 8.507059e+37  ;;  %v1851_v3 = vsub.f32 0.0, %v4033_v20 }
 0x885   : > { %v1662_v43 = vadd.f32 %v3163_v25, %v1661_v26  ;;  %v4056_v49 = vpop.eup %3168  ;;  %v1674_v52 = vmul.f32 %v3167_v47, %v4040_v30  ;;  %vm1679_vm9 = vweird.f32 %v3167_v47 }
 0x886   : > { %v1707_v45 = vadd.f32 %v3165_v28, %v1706_v40  ;;  %v1689_v55 = vmul.f32 %v4056_v49, %v4042_v32  ;;  %vm1680_vm11 = vmor %vm1678_vm10, %vm1679_vm9  ;;  %vm1694_vm13 = vweird.f32 %v4056_v49  ;;  %v1861_v40 = vmul.f32 %v1853_v34, %v4014_v4 }
 0x887   : > { %v1666_v48 = vsel %vm1665_vm4, %v3163_v25, %v1662_v43  ;;  %v1675_v57 = vsub.f32 1.0, %v1674_v52  ;;  %v1682_v25 = vand.u32 2147483647, %v4040_v30  ;;  %v1699_v43 = vand.u32 2147483648, %v4042_v32  ;;  %vm1695_vm15 = vmor %vm1693_vm14, %vm1694_vm13 }
 0x888   : > { %v4058_v50 = vsel %vm1668_vm6, %v1670_v44, %v1666_v48  ;;  %v1711_v1 = vsel %vm1710_vm7, %v3165_v28, %v1707_v45  ;;  %v1690_v51 = vsub.f32 1.0, %v1689_v55  ;;  %v4079_v28 = vadd.f32 1.0, %v1646_v9  ;;  %v1587_v45 = vpop.f32.mrf.mxu2 }
 0x889   : > { %v1778_v53 = vmul.f32 1.0614054, %v4058_v50  ;;  %v4062_v54 = vsel %vm1713_vm8, %v1715_v8, %v1711_v1  ;;  %v1676_v7 = vmul.f32 %v3167_v47, %v1675_v57  ;;  %vm1683_vm12 = vcmp.eq.f32.partialorder %v1682_v25, 8.507059e+37 }
 0x88a   : > { %v1781_v56 = vmul.f32 1.0614054, %v4062_v54  ;;  %v1691_v31 = vmul.f32 %v4056_v49, %v1690_v51  ;;  %3170 = vrcp.f32 %v4079_v28  ;;  %v1866_v44 = vmul.f32 1.442695, %v1858_v35 }
 0x88b   : > { %v1786_v59 = vadd.f32 -1.4531521, %v1778_v53  ;;  %v1677_v24 = vadd.f32 %v3167_v47, %v1676_v7  ;;  %3172 = vrcp.f32 %v4084_v21  ;;  %v1872_v53 = vmul.f32 1.442695, %v1861_v40 }
 0x88c   : > { %v1789_v5 = vadd.f32 -1.4531521, %v1781_v56  ;;  %v1692_v38 = vadd.f32 %v4056_v49, %v1691_v31  ;;  %v1700_v55 = vor.u32 1.1754944e-38, %v1699_v43  ;;  %v4105_v56 = vadd.f32 %v1587_v45, %v1395_v63 }
 0x88d   : > { %v1794_v10 = vmul.f32 %v1786_v59, %v4058_v50  ;;  %v1681_v36 = vsel %vm1680_vm11, %v3167_v47, %v1677_v24  ;;  %3174 = vpow2.f32 %v1866_v44  ;;  %v1729_v59 = vand.u32 2147483648, %v4079_v28 }
 0x88e   : > { %v1797_v29 = vmul.f32 %v1789_v5, %v4062_v54  ;;  %v4094_v42 = vsel %vm1683_vm12, %v1685_v37, %v1681_v36  ;;  %v1696_v1 = vsel %vm1695_vm15, %v4056_v49, %v1692_v38  ;;  %v1727_v5 = vand.u32 2147483647, %v4079_v28  ;;  %v2937_v36 = vld [vmem:[#allocation17 + $0x38] sm:$0xff] }
 0x88f   : > { %v1802_v33 = vadd.f32 1.4214138, %v1794_v10  ;;  %v1779_v8 = vmul.f32 1.0614054, %v4094_v42  ;;  %v4108_v51 = vsel %vm1698_vm0, %v1700_v55, %v1696_v1  ;;  %v1854_v49 = vsub.f32 0.0, %v4068_v58  ;;  %2202 = vmatpush.bf16.msra.mxu1 %v2937_v36 }
 0x890   : > { %v1805_v26 = vadd.f32 1.4214138, %v1797_v29  ;;  %v3171_v47 = vpop.eup %3170  ;;  %vm1723_vm2 = vweird.f32 %v4079_v28  ;;  %v4116_v24 = vmul.f32 0.70710677, %v4105_v56  ;;  %v1780_v25 = vmul.f32 1.0614054, %v4108_v51 }
 0x891   : > { %v1810_v30 = vmul.f32 %v1802_v33, %v4058_v50  ;;  %v1719_v4 = vmul.f32 %v3171_v47, %v4079_v28  ;;  %v3173_v57 = vpop.eup %3172  ;;  %v1787_v10 = vadd.f32 -1.4531521, %v1779_v8  ;;  %vm1724_vm1 = vweird.f32 %v3171_v47  ;;  %v2961_v28 = vld [vmem:[#allocation17 + $0xf8] sm:$0xff] }
 0x892   : > { %v1813_v48 = vmul.f32 %v1805_v26, %v4062_v54  ;;  %v1764_v7 = vmul.f32 %v3173_v57, %v4084_v21  ;;  %v1730_v29 = vor.u32 1.1754944e-38, %v1729_v59  ;;  %v1774_v31 = vand.u32 2147483648, %v4084_v21  ;;  %vm1725_vm3 = vmor %vm1723_vm2, %vm1724_vm1  ;;  %2244 = vmatpush.bf16.msrb.mxu0 %v2961_v28 }
 0x893   : > { %v1818_v52 = vadd.f32 -0.28449672, %v1810_v30  ;;  %v1720_v32 = vsub.f32 1.0, %v1719_v4  ;;  %vm1769_vm4 = vweird.f32 %v3173_v57  ;;  %v1772_v34 = vand.u32 2147483647, %v4084_v21  ;;  %v3175_v37 = vpop.eup %3174  ;;  %v2936_v4 = vld [vmem:[#allocation17 + $0x30] sm:$0xff] }
 0x894   : > { %v1821_v9 = vadd.f32 -0.28449672, %v1813_v48  ;;  %v1765_v16 = vsub.f32 1.0, %v1764_v7  ;;  %v4122_v35 = vand.u32 2147483647, %v4116_v24  ;;  %v1795_v38 = vmul.f32 %v1787_v10, %v4094_v42  ;;  %2203 = vmatpush.bf16.msra.mxu1 %v2936_v4 }
 0x895   : > { %v1721_v14 = vmul.f32 %v3171_v47, %v1720_v32  ;;  %v1826_v63 = vmul.f32 %v1818_v52, %v4058_v50  ;;  %vm1728_vm5 = vcmp.eq.f32.partialorder %v1727_v5, 8.507059e+37  ;;  %vm1768_vm6 = vweird.f32 %v4084_v21  ;;  %v2960_v52 = vld [vmem:[#allocation17 + $0xf0] sm:$0xff]  ;;  %v1601_v5 = vpop.f32.mrf.mxu3 }
 0x896   : > { %v1766_v33 = vmul.f32 %v3173_v57, %v1765_v16  ;;  %v1829_v26 = vmul.f32 %v1821_v9, %v4062_v54  ;;  %vm1770_vm7 = vmor %vm1768_vm6, %vm1769_vm4  ;;  %v1775_v48 = vor.u32 1.1754944e-38, %v1774_v31  ;;  %v1647_v8 = vmul.f32 0.3275911, %v4122_v35  ;;  %2245 = vmatpush.bf16.msrb.mxu0 %v2960_v52 }
 0x897   : > { %v1722_v27 = vadd.f32 %v3171_v47, %v1721_v14  ;;  %v1834_v40 = vadd.f32 0.2548296, %v1826_v63  ;;  %3176 = vpow2.f32 %v1872_v53  ;;  %vm1773_vm8 = vcmp.eq.f32.partialorder %v1772_v34, 8.507059e+37  ;;  %v2945_v53 = vld [vmem:[#allocation17 + $0x78] sm:$0xff] }
 0x898   : > { %v1767_v44 = vadd.f32 %v3173_v57, %v1766_v33  ;;  %v1857_v1 = vsub.f32 0.0, %v4071_v11  ;;  %v1837_v55 = vadd.f32 0.2548296, %v1829_v26  ;;  %v1803_v21 = vadd.f32 1.4214138, %v1795_v38  ;;  %2216 = vmatpush.bf16.msra.mxu2 %v2945_v53  ;;  %v2952_v26 = vld [vmem:[#allocation17 + $0xb0] sm:$0xff] }
 0x899   : > { %v1726_v30 = vsel %vm1725_vm3, %v3171_v47, %v1722_v27  ;;  %v1842_v7 = vmul.f32 %v1834_v40, %v4058_v50  ;;  %v1862_v9 = vmul.f32 %v1854_v49, %v4068_v58  ;;  %v4139_v14 = vadd.f32 1.0, %v1647_v8  ;;  %v2935_v58 = vld [vmem:[#allocation17 + $0x28] sm:$0xff]  ;;  %v2958_v8 = vld [vmem:[#allocation17 + $0xe0] sm:$0xff] }
 0x89a   : > { %v4126_v43 = vsel %vm1728_vm5, %v1730_v29, %v1726_v30  ;;  %v1771_v47 = vsel %vm1770_vm7, %v3173_v57, %v1767_v44  ;;  %v2953_v57 = vld [vmem:[#allocation17 + $0xb8] sm:$0xff]  ;;  %v1859_v63 = vmul.f32 %v1851_v3, %v4033_v20  ;;  %v1788_v16 = vadd.f32 -1.4531521, %v1780_v25  ;;  %v2959_v49 = vld [vmem:[#allocation17 + $0xe8] sm:$0xff]  ;;  %2204 = vmatpush.bf16.msra.mxu1 %v2935_v58 }
 0x89b   : > { %v1782_v45 = vmul.f32 1.0614054, %v4126_v43  ;;  %v4134_v59 = vsel %vm1773_vm8, %v1775_v48, %v1771_v47  ;;  %v1865_v31 = vmul.f32 %v1857_v1, %v4071_v11  ;;  %3178 = vrcp.f32 %v4139_v14  ;;  %2230 = vmatpush.bf16.msra.mxu3 %v2953_v57  ;;  %2246 = vmatpush.bf16.msrb.mxu0 %v2959_v49  ;;  %v2933_v57 = vld [vmem:[#allocation17 + $0x18] sm:$0xff] }
 0x89c   : > { %v1785_v10 = vmul.f32 1.0614054, %v4134_v59  ;;  %v4147_v50 = vadd.f32 %v1601_v5, %v1396_v15  ;;  %v1845_v33 = vmul.f32 %v1837_v55, %v4062_v54  ;;  %v1811_v20 = vmul.f32 %v1803_v21, %v4094_v42  ;;  %v2944_v15 = vld [vmem:[#allocation17 + $0x70] sm:$0xff]  ;;  %v2943_v55 = vld [vmem:[#allocation17 + $0x68] sm:$0xff] }
 0x89d   : > { %v1790_v32 = vadd.f32 -1.4531521, %v1782_v45  ;;  %v3177_v34 = vpop.eup %3176  ;;  %v4152_v36 = vmul.f32 0.5, %v3998_v60  ;;  %v4154_v11 = vmul.f32 %v3175_v37, %v1842_v7  ;;  %v1874_v28 = vmul.f32 1.442695, %v1862_v9  ;;  %2217 = vmatpush.bf16.msra.mxu2 %v2944_v15  ;;  %v2951_v21 = vld [vmem:[#allocation17 + $0xa8] sm:$0xff] }
 0x89e   : > { %v1793_v29 = vadd.f32 -1.4531521, %v1785_v10  ;;  %v4158_v38 = vmul.f32 0.5, %v4000_v61  ;;  %v1868_v54 = vmul.f32 1.442695, %v1859_v63  ;;  %v1796_v30 = vmul.f32 %v1788_v16, %v4108_v51  ;;  %v2934_v61 = vld [vmem:[#allocation17 + $0x20] sm:$0xff] }
 0x89f   : > { %v1798_v27 = vmul.f32 %v1790_v32, %v4126_v43  ;;  %v1880_v60 = vmul.f32 1.442695, %v1865_v31  ;;  %v4163_v37 = vmul.f32 0.70710677, %v4147_v50  ;;  %2231 = vmatpush.bf16.msra.mxu3 %v2952_v26  ;;  %vm1898_vm9 = vcmp.ge.f32.partialorder %v4003_v62, 0.0  ;;  %2205 = vmatpush.bf16.msra.mxu1 %v2934_v61  ;;  %v2957_v31 = vld [vmem:[#allocation17 + $0xd8] sm:$0xff] }
 0x8a0   : > { %v1801_v0 = vmul.f32 %v1793_v29, %v4134_v59  ;;  %v4166_v3 = vmul.f32 %v3177_v34, %v1845_v33  ;;  %v1819_v45 = vadd.f32 -0.28449672, %v1811_v20  ;;  %v1890_v1 = vsub.f32 1.0, %v4154_v11  ;;  %2247 = vmatpush.bf16.msrb.mxu0 %v2958_v8  ;;  %v2950_v34 = vld [vmem:[#allocation17 + $0xa0] sm:$0xff] }
 0x8a1   : > { %v1806_v25 = vadd.f32 1.4214138, %v1798_v27  ;;  %v4168_v47 = vpop.eup %3178  ;;  %3180 = vpow2.f32 %v1874_v28  ;;  %v4173_v52 = vand.u32 2147483647, %v4163_v37  ;;  %v1804_v32 = vadd.f32 1.4214138, %v1796_v30  ;;  %2218 = vmatpush.bf16.msra.mxu2 %v2943_v55 }
 0x8a2   : > { %v1809_v44 = vadd.f32 1.4214138, %v1801_v0  ;;  %3182 = vpow2.f32 %v1868_v54  ;;  %v1734_v7 = vmul.f32 %v4168_v47, %v4139_v14  ;;  %vm1901_vm10 = vcmp.ge.f32.partialorder %v4007_v2, 0.0  ;;  %v2941_v55 = vld [vmem:[#allocation17 + $0x58] sm:$0xff] }
 0x8a3   : > { %v1814_v40 = vmul.f32 %v1806_v25, %v4126_v43  ;;  %v1852_v9 = vsub.f32 0.0, %v4036_v23  ;;  %3184 = vpow2.f32 %v1880_v60  ;;  %v1648_v53 = vmul.f32 0.3275911, %v4173_v52  ;;  %2232 = vmatpush.bf16.msra.mxu3 %v2951_v21  ;;  %v2942_v25 = vld [vmem:[#allocation17 + $0x60] sm:$0xff]  ;;  %2206 = vmatpush.bf16.msra.mxu1 %v2933_v57  ;;  %v2949_v21 = vld [vmem:[#allocation17 + $0x98] sm:$0xff] }
 0x8a4   : > { %v1817_v4 = vmul.f32 %v1809_v44, %v4134_v59  ;;  %v1893_v63 = vsub.f32 1.0, %v4166_v3  ;;  %v1827_v16 = vmul.f32 %v1819_v45, %v4094_v42  ;;  %v1735_v29 = vsub.f32 1.0, %v1734_v7  ;;  %2248 = vmatpush.bf16.msrb.mxu0 %v2957_v31  ;;  %v2940_v31 = vld [vmem:[#allocation17 + $0x50] sm:$0xff] }
 0x8a5   : > { %v1822_v48 = vadd.f32 -0.28449672, %v1814_v40  ;;  %v1906_v58 = vsub.f32 0.0, %v1890_v1  ;;  %v1744_v33 = vand.u32 2147483648, %v4139_v14  ;;  %v4185_v20 = vadd.f32 1.0, %v1648_v53  ;;  %2219 = vmatpush.bf16.msra.mxu2 %v2942_v25  ;;  %v2956_v40 = vld [vmem:[#allocation17 + $0xd0] sm:$0xff] }
 0x8a6   : > { %v1825_v10 = vadd.f32 -0.28449672, %v1817_v4  ;;  %v1736_v28 = vmul.f32 %v4168_v47, %v1735_v29  ;;  %vm1739_vm11 = vweird.f32 %v4168_v47  ;;  %v1742_v0 = vand.u32 2147483647, %v4139_v14 }
 0x8a7   : > { %v1830_v5 = vmul.f32 %v1822_v48, %v4126_v43  ;;  %v3181_v15 = vpop.eup %3180  ;;  %v1812_v26 = vmul.f32 %v1804_v32, %v4108_v51  ;;  %v4193_v54 = vmul.f32 %v1852_v9, %v4036_v23  ;;  %3186 = vrcp.f32 %v4185_v20  ;;  %2233 = vmatpush.bf16.msra.mxu3 %v2950_v34  ;;  %v2955_v9 = vld [vmem:[#allocation17 + $0xc8] sm:$0xff] }
 0x8a8   : > { %v1833_v49 = vmul.f32 %v1825_v10, %v4134_v59  ;;  %v4196_v44 = vpop.eup %3182  ;;  %v1909_v60 = vsub.f32 0.0, %v1893_v63  ;;  %v1737_v45 = vadd.f32 %v4168_v47, %v1736_v28  ;;  %vm1738_vm12 = vweird.f32 %v4139_v14  ;;  %2249 = vmatpush.bf16.msrb.mxu0 %v2956_v40  ;;  %v2954_v28 = vld [vmem:[#allocation17 + $0xc0] sm:$0xff] }
 0x8a9   : > { %v1838_v27 = vadd.f32 0.2548296, %v1830_v5  ;;  %v3185_v48 = vpop.eup %3184  ;;  %v1914_v23 = vsel %vm1898_vm9, %v1890_v1, %v1906_v58  ;;  %v1622_v61 = vmul.f32 0.5, %v4046_v22  ;;  %vm1740_vm13 = vmor %vm1738_vm12, %vm1739_vm11  ;;  %v1745_v4 = vor.u32 1.1754944e-38, %v1744_v33  ;;  %2220 = vmatpush.bf16.msra.mxu2 %v2941_v55  ;;  %v2948_v58 = vld [vmem:[#allocation17 + $0x90] sm:$0xff] }
 0x8aa   : > { %v1841_v30 = vadd.f32 0.2548296, %v1833_v49  ;;  %v1835_v32 = vadd.f32 0.2548296, %v1827_v16  ;;  %v1741_v7 = vsel %vm1740_vm13, %v4168_v47, %v1737_v45  ;;  %vm1743_vm14 = vcmp.eq.f32.partialorder %v1742_v0, 8.507059e+37 }
 0x8ab   : > { %v1846_v11 = vmul.f32 %v1838_v27, %v4126_v43  ;;  %v2932_v43 = vld [vmem:[#allocation17 + $0x10] sm:$0xff]  ;;  %v1820_v14 = vadd.f32 -0.28449672, %v1812_v26  ;;  %v4207_v1 = vsel %vm1743_vm14, %v1745_v4, %v1741_v7  ;;  %v1855_v22 = vsub.f32 0.0, %v4122_v35  ;;  %2234 = vmatpush.bf16.msra.mxu3 %v2949_v21  ;;  %v2938_v7 = vld [vmem:[#allocation17 + $0x40] sm:$0xff] }
 0x8ac   : > { %v1849_v8 = vmul.f32 %v1841_v30, %v4134_v59  ;;  %2207 = vmatpush.bf16.msra.mxu1 %v2932_v43  ;;  %v2931_v59 = vld [vmem:[#allocation17 + $0x8] sm:$0xff]  ;;  %v1922_v10 = vadd.f32 1.0, %v1914_v23  ;;  %v1917_v53 = vsel %vm1901_vm10, %v1893_v63, %v1909_v60  ;;  %v1783_v47 = vmul.f32 1.0614054, %v4207_v1  ;;  %2250 = vmatpush.bf16.msrb.mxu0 %v2955_v9 }
 0x8ad   : > { %v1886_v3 = vmul.f32 %v3181_v15, %v1846_v11  ;;  %v3187_v16 = vpop.eup %3186  ;;  %vm1902_vm15 = vcmp.ge.f32.partialorder %v4051_v46, 0.0  ;;  %v1625_v27 = vmul.f32 0.5, %v4048_v39  ;;  %vm1905_vm0 = vcmp.ge.f32.partialorder %v4054_v12, 0.0  ;;  %2221 = vmatpush.bf16.msra.mxu2 %v2940_v31  ;;  %v2930_v39 = vld [vmem:[#allocation17] sm:$0xff] }
 0x8ae   : > { %v1889_v62 = vmul.f32 %v3185_v48, %v1849_v8  ;;  %v1843_v49 = vmul.f32 %v1835_v32, %v4094_v42  ;;  %v1791_v25 = vadd.f32 -1.4531521, %v1783_v47  ;;  %v1749_v2 = vmul.f32 %v3187_v16, %v4185_v20 }
 0x8af   : > { %v1894_v5 = vsub.f32 1.0, %v1886_v3  ;;  %v1925_v63 = vadd.f32 1.0, %v1917_v53  ;;  %v1863_v46 = vmul.f32 %v1855_v22, %v4122_v35  ;;  %2235 = vmatpush.bf16.msra.mxu3 %v2948_v58  ;;  %v1930_v0 = vmul.f32 %v1922_v10, %v4152_v36  ;;  %v2939_v35 = vld [vmem:[#allocation17 + $0x48] sm:$0xff] }
 0x8b0   : > { %v1897_v29 = vsub.f32 1.0, %v1889_v62  ;;  %2208 = vmatpush.bf16.msra.mxu1 %v2931_v59  ;;  %v1828_v15 = vmul.f32 %v1820_v14, %v4108_v51  ;;  %v1799_v42 = vmul.f32 %v1791_v25, %v4207_v1  ;;  %v1750_v26 = vsub.f32 1.0, %v1749_v2  ;;  %v2947_v3 = vld [vmem:[#allocation17 + $0x88] sm:$0xff]  ;;  %2251 = vmatpush.bf16.msrb.mxu0 %v2954_v28  ;;  %v2946_v14 = vld [vmem:[#allocation17 + $0x80] sm:$0xff] }
 0x8b1   : > { %v1910_v57 = vsub.f32 0.0, %v1894_v5  ;;  %v1757_v40 = vand.u32 2147483647, %v4185_v20  ;;  %v1759_v60 = vand.u32 2147483648, %v4185_v20  ;;  %vm1754_vm1 = vweird.f32 %v3187_v16  ;;  %2222 = vmatpush.bf16.msra.mxu2 %v2939_v35 }
 0x8b2   : > { %v1913_v11 = vsub.f32 0.0, %v1897_v29  ;;  %v1807_v48 = vadd.f32 1.4214138, %v1799_v42  ;;  %v1751_v23 = vmul.f32 %v3187_v16, %v1750_v26  ;;  %v1933_v36 = vmul.f32 %v1925_v63, %v4158_v38 }
 0x8b3   : > { %v1918_v33 = vsel %vm1902_vm15, %v1894_v5, %v1910_v57  ;;  %v1883_v8 = vmul.f32 %v4196_v44, %v1843_v49  ;;  %v1876_v4 = vmul.f32 1.442695, %v1863_v46  ;;  %2236 = vmatpush.bf16.msra.mxu3 %v2947_v3  ;;  %vm1753_vm2 = vweird.f32 %v4185_v20 }
 0x8b4   : > { %v1926_v34 = vadd.f32 1.0, %v1918_v33  ;;  %v1921_v43 = vsel %vm1905_vm0, %v1897_v29, %v1913_v11  ;;  %2209 = vmatpush.bf16.msra.mxu1 %v2930_v39  ;;  %v1815_v55 = vmul.f32 %v1807_v48, %v4207_v1  ;;  %v1752_v21 = vadd.f32 %v3187_v16, %v1751_v23  ;;  %vm1755_vm3 = vmor %vm1753_vm2, %vm1754_vm1 }
 0x8b5   : > { %v1929_v45 = vadd.f32 1.0, %v1921_v43  ;;  %v1870_v32 = vmul.f32 1.442695, %v4193_v54  ;;  %v1760_v5 = vor.u32 1.1754944e-38, %v1759_v60  ;;  %vm1758_vm4 = vcmp.eq.f32.partialorder %v1757_v40, 8.507059e+37  ;;  %2223 = vmatpush.bf16.msra.mxu2 %v2938_v7 }
 0x8b6   : > { %v1934_v30 = vmul.f32 %v1926_v34, %v1622_v61  ;;  %v1823_v62 = vadd.f32 -0.28449672, %v1815_v55  ;;  %v1756_v44 = vsel %vm1755_vm3, %v3187_v16, %v1752_v21  ;;  %3188 = vpow2.f32 %v1876_v4  ;;  %v3119_v21 = vld [vmem:[%s4320_s19] ss:$0 sm:$0xff] }
 0x8b7   : > { %v1937_v12 = vmul.f32 %v1929_v45, %v1625_v27  ;;  %v1761_v22 = vsel %vm1758_vm4, %v1760_v5, %v1756_v44  ;;  %v1856_v59 = vsub.f32 0.0, %v4173_v52  ;;  %2237 = vmatpush.bf16.msra.mxu3 %v2946_v14  ;;  %v1891_v9 = vsub.f32 1.0, %v1883_v8 }
 0x8b8   : > { %v1938_v61 = vpack.c.bf16 %v1934_v30, %v1930_v0  ;;  %v1836_v10 = vadd.f32 0.2548296, %v1828_v15  ;;  %v1831_v20 = vmul.f32 %v1823_v62, %v4207_v1  ;;  %v1784_v54 = vmul.f32 1.0614054, %v1761_v22 }
 0x8b9   : > { %v1941_v38 = vpack.c.bf16 %v1937_v12, %v1933_v36  ;;  %3190 = vpow2.f32 %v1870_v32  ;;  %v1864_v47 = vmul.f32 %v1856_v59, %v4173_v52  ;;  %v1907_v27 = vsub.f32 0.0, %v1891_v9 }
 0x8ba   : > { %2210 = vmatmul.bf16.vlgmr.msra.gmra.mxu1 %v1938_v61  ;;  %v1839_v53 = vadd.f32 0.2548296, %v1831_v20  ;;  %v1792_v57 = vadd.f32 -1.4531521, %v1784_v54  ;;  %v1844_v16 = vmul.f32 %v1836_v10, %v4108_v51  ;;  %vm1899_vm5 = vcmp.ge.f32.partialorder %v4027_v17, 0.0 }
 0x8bb   : > { %2252 = vmatmul.bf16.vlgmr.msrb.gmra.mxu0 %v1941_v38  ;;  %v1878_v2 = vmul.f32 1.442695, %v1864_v47  ;;  %v1915_v63 = vsel %vm1899_vm5, %v1891_v9, %v1907_v27  ;;  %vm1903_vm6 = vcmp.ge.f32.partialorder %v4116_v24, 0.0  ;;  %v1619_v15 = vmul.f32 0.5, %v4019_v18 }
 0x8bc   : > { %v1847_v29 = vmul.f32 %v1839_v53, %v4207_v1  ;;  %v1800_v31 = vmul.f32 %v1792_v57, %v1761_v22  ;;  %v3189_v58 = vpop.eup %3188  ;;  %v1923_v52 = vadd.f32 1.0, %v1915_v63  ;;  %v1623_v42 = vmul.f32 0.5, %v4105_v56 }
 0x8bd   : > { %3192 = vpow2.f32 %v1878_v2  ;;  %vm1900_vm7 = vcmp.ge.f32.partialorder %v4030_v19, 0.0  ;;  %vm1904_vm8 = vcmp.ge.f32.partialorder %v4163_v37, 0.0  ;;  %v1620_v56 = vmul.f32 0.5, %v4024_v13 }
 0x8be   : > { %v1887_v49 = vmul.f32 %v3189_v58, %v1847_v29  ;;  %v1808_v33 = vadd.f32 1.4214138, %v1800_v31  ;;  %v1931_v30 = vmul.f32 %v1923_v52, %v1619_v15  ;;  %v1624_v8 = vmul.f32 0.5, %v4147_v50 }
 0x8bf   : > { %v3191_v25 = vpop.eup %3190 }
 0x8c0   : > { %v1884_v34 = vmul.f32 %v3191_v25, %v1844_v16  ;;  %v1895_v11 = vsub.f32 1.0, %v1887_v49  ;;  %v1816_v46 = vmul.f32 %v1808_v33, %v1761_v22 }
 0x8c2   : > { %v1911_v39 = vsub.f32 0.0, %v1895_v11  ;;  %v1824_v28 = vadd.f32 -0.28449672, %v1816_v46  ;;  %v1892_v51 = vsub.f32 1.0, %v1884_v34 }
 0x8c3   : > { %v3193_v35 = vpop.eup %3192 }
 0x8c4   : > { %v1919_v1 = vsel %vm1903_vm6, %v1895_v11, %v1911_v39  ;;  %v1832_v0 = vmul.f32 %v1824_v28, %v1761_v22  ;;  %v1908_v40 = vsub.f32 0.0, %v1892_v51 }
 0x8c5   : > { %v1927_v26 = vadd.f32 1.0, %v1919_v1 }
 0x8c6   : > { %v1840_v17 = vadd.f32 0.2548296, %v1832_v0  ;;  %v1916_v24 = vsel %vm1900_vm7, %v1892_v51, %v1908_v40 }
 0x8c7   : > { %v1935_v43 = vmul.f32 %v1927_v26, %v1623_v42  ;;  %v1924_v36 = vadd.f32 1.0, %v1916_v24 }
 0x8c8   : > { %v1848_v60 = vmul.f32 %v1840_v17, %v1761_v22 }
 0x8c9   : > { %v1939_v3 = vpack.c.bf16 %v1935_v43, %v1931_v30  ;;  %v1932_v4 = vmul.f32 %v1924_v36, %v1620_v56 }
 0x8ca   : > { %v1888_v45 = vmul.f32 %v3193_v35, %v1848_v60 }
 0x8cb   : > { %2224 = vmatmul.bf16.vlgmr.msra.gmra.mxu2 %v1939_v3 }
 0x8cc   : > { %v1896_v48 = vsub.f32 1.0, %v1888_v45 }
 0x8ce   : > { %v1912_v23 = vsub.f32 0.0, %v1896_v48 }
 0x8d0   : > { %v1920_v18 = vsel %vm1904_vm8, %v1896_v48, %v1912_v23 }
 0x8d1   : > { %v1928_v61 = vadd.f32 1.0, %v1920_v18 }
 0x8d3   : > { %v1936_v12 = vmul.f32 %v1928_v61, %v1624_v8 }
 0x8d5   : > { %v1940_v55 = vpack.c.bf16 %v1936_v12, %v1932_v4 }
 0x8d7   : > { %2238 = vmatmul.bf16.vlgmr.msra.gmra.mxu3 %v1940_v55 }
 0x937   : > { %v2211_v19 = vpop.f32.mrf.mxu1 }
 0x938   : > { %v2212_v5 = vadd.f32 %v3119_v21, %v2211_v19  ;;  %v2253_v7 = vpop.f32.mrf.mxu0 }
 0x93f   : > { %v2213_v14 = vpop.f32.mrf.mxu1 }
 0x940   : > { %v2214_v62 = vadd.f32 %v3119_v21, %v2213_v14  ;;  %v2255_v20 = vpop.f32.mrf.mxu0 }
 0x94e   : > { %v2225_v32 = vpop.f32.mrf.mxu2 }
 0x94f   : > { %v2226_v37 = vadd.f32 %v2225_v32, %v2212_v5 }
 0x956   : > { %v2227_v50 = vpop.f32.mrf.mxu2 }
 0x957   : > { %v2228_v59 = vadd.f32 %v2227_v50, %v2214_v62 }
 0x95a   : > { %v2239_v13 = vpop.f32.mrf.mxu3 }
 0x95b   : > { %v2240_v38 = vadd.f32 %v2239_v13, %v2226_v37 }
 0x95d   : > { %v2254_v44 = vadd.f32 %v2253_v7, %v2240_v38 }
 0x95f   : > { %v2258_v22 = vadd.f32 %v2254_v44, %v3968_v41 }
 0x961   : > { %2260 = vst [vmem:[%s599_s6] sm:$0xff] %v2258_v22 }
 0x962   : > { %v2241_v9 = vpop.f32.mrf.mxu3 }
 0x963   : > { %v2242_v10 = vadd.f32 %v2241_v9, %v2228_v59 }
 0x965   : > { %v2256_v54 = vadd.f32 %v2255_v20, %v2242_v10 }
 0x967   : > { %v2259_v53 = vadd.f32 %v2256_v54, %v3972_v6 }
 0x969   : > { %2261 = vst [vmem:[%s599_s6 + $0x8] sm:$0xff] %v2259_v53 }
 0x96a   : > { %3521 = shalt.err (!%p3518_p9)
}
 0x96b   : > { %s3603_s29 = smov 128   ;;  %s3604_s14 = smov 8  }
 0x96c   : > { %3001 = dma.vmem_to_hbm [thread:$0]  (%p3785_p0), %s2276_s18, 256, %s2278_s24, %s2263_s15, %s3603_s29, %s3603_s29, %s3604_s14  }
 0x96d PF: > { %s2292_s6 = sand.u32 1, %s3568_s25   ;;  %p4322_p10 = scmp.ge.s32.totalorder %s3580_s28, 2 }
 0x96e   : > { %s2293_s17 = scalar_lea.sflag [#allocation4], %s2292_s6 }
 0x96f   : > { %p3036_p11 = pnand %p4322_p10, %p3791_p6 }
 0x971   : > { %p3037_p12 = pneg %p3036_p11 }
 0x973   : > { %3563 = dma.done.wait (%p3037_p12), %s2293_s17, 256  }
 0x974   : > { %3565 = vsyncadd (%p3037_p12), %s2293_s17, 4294967040  ;;  %p31_p2 = scmp.ge.s32.totalorder %s3761_s1, 4   ;;  %s4323_s25 = smov %s3572_s26 }
 0x975   : > { %s4324_s26 = smov %s3576_s27  ;;  %s4325_s27 = smov %s3773_s30 }
 0x976   : > { %s4326_s28 = smov %s3761_s1  ;;  %33 = sbr.rel (!%p31_p2) target bundleno = 19 (0x13), region = 153 }
 0x97b   :  { %2299 = vsyncpa [#allocation3], 1 }
 0x97c   :  { %2301 = vsyncpa [#allocation3 + $0x1], 1 }
 0x97d   :  { %2302 = vsyncpa [#allocation6], 1 }
 0x97e   :  { %2303 = vsyncpa [#allocation9], 1 }
 0x97f   :  { %2304 = vsyncpa [#allocation12], 1 }
 0x980   :  { %2305 = vsyncpa [#allocation15], 1 }
 0x981   :  { %2306 = vsyncpa [#allocation18], 1 }
 0x982   :  { %2307 = vsyncpa [#allocation4], 1 }
 0x983   :  { %2309 = vsyncpa [#allocation4 + $0x1], 1 }

</bundles_post_ra>
